<compile_context>
chip_gen: v5e
topology: v5e:2x2
jax: 0.10.0
libtpu: 0.0.40
codegen_flags: <defaults>
</compile_context>

<pallas_src>
import numpy as np
import jax
import jax.numpy as jnp
from jax.experimental import pallas as pl
from jax.experimental.pallas import tpu as pltpu

NEG = -1.0e30     # finite stand-in for -inf in the log-domain DP
L_PAD = 128       # extended-label axis padded to one lane register (needs 2*S+1 <= 128)
BB = 16           # batch samples per grid block -> alpha = two (8,128) f32 vregs


def _ctc_kernel(flen_sm, tmax_sm, lastc_sm,                  # scalar prefetch (SMEM)
                logits_ref, ext_ref, flen_ref, ylen_ref,     # VMEM inputs
                loss_ref,                                    # VMEM output (BB, L_PAD)
                g_scr):                                      # VMEM scratch (BB*T_pad, L_PAD)
    b = pl.program_id(0)
    tc = pl.program_id(1)
    n_tc = pl.num_programs(1)
    tT = logits_ref.shape[1]
    C = logits_ref.shape[2]
    T_pad = g_scr.shape[0] // BB
    base = b * BB
    last_c = lastc_sm[b]          # last useful time chunk for this batch block

    # ---------- phase 1: per-sample log-softmax + extended-label gather ------
    # Chunks past the block's max input length are skipped entirely (their HBM
    # DMA is also deduped because the logits index_map clamps the chunk index).
    @pl.when(tc <= last_c)
    def _gather():
        t0 = tc * tT
        class_iota = jax.lax.broadcasted_iota(jnp.int32, (C, L_PAD), 0)
        for i in range(BB):                                   # static unroll
            @pl.when(t0 < flen_sm[base + i])                  # skip padded time per sample
            def _one_sample(i=i):
                lg = logits_ref[i]                            # (tT, C), input dtype
                lgf = lg.astype(jnp.float32)
                mx = jnp.max(lgf, axis=-1, keepdims=True)     # (tT, 1)
                logz = jnp.log(jnp.sum(jnp.exp(lgf - mx), axis=-1, keepdims=True))
                # MXU gather in the input dtype (exact: one nonzero per column);
                # the log-softmax shift is applied to the (tT, 128) result.
                onehot = (class_iota == ext_ref[pl.ds(i, 1), :]).astype(lg.dtype)
                raw = jnp.dot(lg, onehot, preferred_element_type=jnp.float32)
                row0 = i * T_pad + t0
                if (T_pad % 8 == 0) and (tT % 8 == 0):
                    row0 = pl.multiple_of(row0, 8)
                g_scr[pl.ds(row0, tT), :] = raw - (mx + logz)

    # ---------- phase 2: batched alpha (forward) recursion + loss ------------
    @pl.when(tc == n_tc - 1)
    def _dp():
        lane = jax.lax.broadcasted_iota(jnp.int32, (BB, L_PAD), 1)
        neg = jnp.full((BB, L_PAD), NEG, dtype=jnp.float32)   # hoisted broadcast
        ext_all = ext_ref[...]                                # (BB, L_PAD) int32
        # skip transition allowed into odd (label) lanes whose label is not the
        # blank and differs from the label two slots back
        skip_ok = ((jnp.bitwise_and(lane, 1) == 1) & (lane >= 3)
                   & (ext_all != 0)
                   & (ext_all != pltpu.roll(ext_all, shift=2, axis=1)))
        skip = jnp.where(skip_ok, 0.0, NEG)
        mask1 = lane >= 1
        mask2 = lane >= 2
        f_vec = flen_ref[...]                                 # (BB, 1) int32
        y_vec = ylen_ref[...]                                 # (BB, 1) int32
        t_max = tmax_sm[b]                                    # block max input length

        def g_row(t):                                         # (BB, 128) for time step t
            return g_scr[pl.ds(t, BB, stride=T_pad), :]

        alpha0 = jnp.where(lane < 2, g_row(0), neg)
        g1 = g_row(jnp.minimum(1, t_max - 1))                 # prefetch g for t = 1

        def body(t, carry):
            alpha, g_t = carry
            # prefetch next step's g; load has no dependency on the alpha chain
            g_next = g_row(jnp.minimum(t + 1, t_max - 1))
            a1 = jnp.where(mask1, pltpu.roll(alpha, shift=1, axis=1), neg)
            a2 = jnp.where(mask2, pltpu.roll(alpha, shift=2, axis=1), neg) + skip
            hi = jnp.maximum(alpha, a1)
            lo = jnp.minimum(alpha, a1)
            m = jnp.maximum(hi, a2)
            o1 = jnp.minimum(hi, a2)
            # logsumexp over {alpha, a1, a2}: the max contributes exp(0)=1,
            # so only two EUP exps sit on the serial chain.
            ssum = 1.0 + jnp.exp(o1 - m) + jnp.exp(lo - m)
            new_alpha = jnp.log(ssum) + m + g_t
            alpha = jnp.where(t < f_vec, new_alpha, alpha)    # freeze finished samples
            return alpha, g_next

        alpha, _ = jax.lax.fori_loop(1, t_max, body, (alpha0, g1))

        # loss_b = -logsumexp(alpha[2*y_len], alpha[2*y_len - 1])
        lb = 2 * y_vec + 1
        sel = (lane == lb - 1) | (lane == lb - 2)
        pick = jnp.where(sel, alpha, neg)
        mm = jnp.max(pick, axis=1, keepdims=True)             # (BB, 1)
        ll = jnp.log(jnp.sum(jnp.exp(pick - mm), axis=1, keepdims=True)) + mm
        nll = jnp.where(mm <= NEG * 0.5, jnp.inf, -ll)        # infeasible -> +inf
        loss_ref[...] = jnp.broadcast_to(nll, (BB, L_PAD))    # lane-dense store


def _build_ext(y, S):
    """Extended (blank-interleaved) label sequence padded to L_PAD (blank = 0)."""
    l_idx = jnp.arange(L_PAD)
    is_label = (l_idx % 2 == 1) & (l_idx < 2 * S + 1)
    k = jnp.clip((l_idx - 1) // 2, 0, S - 1)
    return jnp.where(is_label[None, :], y[:, k], 0).astype(jnp.int32)   # (B, L_PAD)


def ctc_loss_pallas(outputs_pred, y, f_len, y_len):
    """Mean over batch of per-sample CTC NLL (blank=0), matching
    nn.CTCLoss(blank=0, reduction='none')(log_softmax(pred).transpose(0,1), ...).mean()."""
    outputs_pred = jnp.asarray(outputs_pred)
    B, T, C = outputs_pred.shape
    S = y.shape[1]
    if 2 * S + 1 > L_PAD:
        raise ValueError(f"target length {S} needs 2*S+1 <= L_PAD={L_PAD}")

    y = jnp.asarray(y).astype(jnp.int32)
    f_len = jnp.asarray(f_len).astype(jnp.int32)
    y_len = jnp.asarray(y_len).astype(jnp.int32)

    # ---- batch padding: multiple of BB; keep an even (>=2) number of blocks
    # when the batch is big enough so both v7x TensorCores get work.
    n_blocks = -(-B // BB)
    if n_blocks > 1 and n_blocks % 2 == 1:
        n_blocks += 1
    B_pad = n_blocks * BB
    pad = B_pad - B
    if pad:
        outputs_pred = jnp.pad(outputs_pred, ((0, pad), (0, 0), (0, 0)))
        y = jnp.pad(y, ((0, pad), (0, 0)))
        f_len = jnp.pad(f_len, (0, pad), constant_values=1)
        y_len = jnp.pad(y_len, (0, pad))

    ext = _build_ext(y, S)                                    # (B_pad, L_PAD) int32

    # ---- time chunking: logits streamed into VMEM in (BB, tT, C) chunks -----
    tT = T if T <= 128 else 128
    n_tc = -(-T // tT)
    T_pad = n_tc * tT

    # ---- per-block scalars (scalar-prefetched into SMEM) --------------------
    f_clip = jnp.clip(f_len, 1, T).astype(jnp.int32)
    blk_tmax = jnp.max(f_clip.reshape(n_blocks, BB), axis=1).astype(jnp.int32)
    blk_lastc = ((blk_tmax + (tT - 1)) // tT - 1).astype(jnp.int32)

    # ---- VMEM budget: real footprint, capped by the device's physical VMEM --
    itemsize = jnp.dtype(outputs_pred.dtype).itemsize
    vmem_est = (2 * BB * tT * C * itemsize        # double-buffered logits chunk
                + BB * T_pad * L_PAD * 4          # gathered log-prob scratch
                + 6 * BB * L_PAD * 4              # ext / out buffers + DP state
                + 4 * tT * C * 4                  # softmax temporaries
                + C * L_PAD * 4 + tT * L_PAD * 4  # one-hot + gather result
                + (2 << 20))                      # headroom
    try:
        phys = int(pltpu.get_tpu_info().vmem_capacity_bytes)
    except Exception:
        phys = 64 << 20
    cap = max(int(phys * 0.9), 32 << 20)
    vmem_limit = int(min(max(vmem_est, 32 << 20), cap))

    grid_spec = pltpu.PrefetchScalarGridSpec(
        num_scalar_prefetch=3,
        grid=(n_blocks, n_tc),
        in_specs=[
            # time-chunk index is clamped to the block's last useful chunk so
            # the pipeline skips re-fetching fully padded chunks
            pl.BlockSpec((BB, tT, C),
                         lambda b, tc, fl, tm, lc: (b, jnp.minimum(tc, lc[b]), 0)),
            pl.BlockSpec((BB, L_PAD), lambda b, tc, fl, tm, lc: (b, 0)),
            pl.BlockSpec((BB, 1), lambda b, tc, fl, tm, lc: (b, 0)),
            pl.BlockSpec((BB, 1), lambda b, tc, fl, tm, lc: (b, 0)),
        ],
        out_specs=pl.BlockSpec((BB, L_PAD), lambda b, tc, fl, tm, lc: (b, 0)),
        scratch_shapes=[pltpu.VMEM((BB * T_pad, L_PAD), jnp.float32)],
    )

    out = pl.pallas_call(
        _ctc_kernel,
        out_shape=jax.ShapeDtypeStruct((B_pad, L_PAD), jnp.float32),
        grid_spec=grid_spec,
        compiler_params=pltpu.CompilerParams(
            dimension_semantics=("parallel", "arbitrary"),
            vmem_limit_bytes=vmem_limit),
    )(f_clip, blk_tmax, blk_lastc,
      outputs_pred, ext, f_clip[:, None], y_len[:, None])

    return jnp.mean(out[:B, 0])


# ----------------------------- pure-python reference -----------------------------
def ctc_loss_ref(logits, y, f_len, y_len):
    logits = np.asarray(logits, np.float64)
    y = np.asarray(y); f_len = np.asarray(f_len); y_len = np.asarray(y_len)
    B, T, C = logits.shape
    losses = []
    for b in range(B):
        Tb, Sb = int(f_len[b]), int(y_len[b])
        lg = logits[b, :Tb]
        lp = lg - np.log(np.sum(np.exp(lg - lg.max(-1, keepdims=True)),
                                axis=-1, keepdims=True)) - lg.max(-1, keepdims=True)
        ext = [0]
        for c in y[b, :Sb]:
            ext += [int(c), 0]
        L = len(ext)
        alpha = np.full(L, -np.inf)
        alpha[0] = lp[0, ext[0]]
        if L > 1:
            alpha[1] = lp[0, ext[1]]
        for t in range(1, Tb):
            new = np.full(L, -np.inf)
            for s in range(L):
                cands = [alpha[s]]
                if s >= 1:
                    cands.append(alpha[s - 1])
                if s >= 2 and ext[s] != 0 and ext[s] != ext[s - 2]:
                    cands.append(alpha[s - 2])
                m = max(cands)
                v = -np.inf if m == -np.inf else m + np.log(sum(np.exp(c - m) for c in cands))
                new[s] = v + lp[t, ext[s]]
            alpha = new
        cands = [alpha[L - 1]] + ([alpha[L - 2]] if L >= 2 else [])
        m = max(cands)
        ll = m + np.log(sum(np.exp(c - m) for c in cands))
        losses.append(-ll)
    return float(np.mean(losses))


if __name__ == "__main__":
    key = jax.random.PRNGKey(0)
    k1, k2 = jax.random.split(key)
    B, T, C, S = 2, 16, 8, 4

    outputs_pred = jax.random.normal(k1, (B, T, C), dtype=jnp.float32)   # [B, T, C]
    y = jax.random.randint(k2, (B, S), 1, C)                             # labels != blank(0)
    y_len = jnp.array([4, 3], dtype=jnp.int32)
    f_len = jnp.array([16, 12], dtype=jnp.int32)

    loss = ctc_loss_pallas(outputs_pred, y, f_len, y_len)
    loss = jax.block_until_ready(loss)

    ref = ctc_loss_ref(np.asarray(outputs_pred), np.asarray(y),
                       np.asarray(f_len), np.asarray(y_len))
    assert np.isfinite(float(loss))
    np.testing.assert_allclose(float(loss), ref, rtol=1e-3, atol=1e-3)
    print("KERNEL_OK")
</pallas_src>

<mosaic_0001>
module attributes {stable_mosaic.version = 11 : i64} {
  func.func @_ctc_kernel(%arg0: i32, %arg1: i32, %arg2: memref<16xi32, #tpu.memory_space<smem>>, %arg3: memref<1xi32, #tpu.memory_space<smem>>, %arg4: memref<1xi32, #tpu.memory_space<smem>>, %arg5: memref<16x16x8xf32, #tpu.memory_space<vmem>>, %arg6: memref<16x128xi32, #tpu.memory_space<vmem>>, %arg7: memref<16x1xi32, #tpu.memory_space<vmem>>, %arg8: memref<16x1xi32, #tpu.memory_space<vmem>>, %arg9: memref<16x128xf32, #tpu.memory_space<vmem>>, %arg10: memref<256x128xf32, #tpu.memory_space<vmem>>) attributes {dimension_semantics = [#tpu.dimension_semantics<parallel>, #tpu.dimension_semantics<arbitrary>], iteration_bounds = array<i64: 1, 1>, scalar_prefetch = 3 : i64, scratch_operands = 1 : i64, tpu.core_type = #tpu.core_type<tc>, window_params = [{transform_indices = @transform_0, window_bounds = array<i64: 16, 16, 8>}, {transform_indices = @transform_1, window_bounds = array<i64: 16, 128>}, {transform_indices = @transform_2, window_bounds = array<i64: 16, 1>}, {transform_indices = @transform_3, window_bounds = array<i64: 16, 1>}, {transform_indices = @transform_4, window_bounds = array<i64: 16, 128>}]} {
    %c16_i32 = arith.constant 16 : i32
    %0 = arith.muli %arg0, %c16_i32 : i32
    %1 = arith.index_cast %arg0 : i32 to index
    %2 = memref.load %arg4[%1] : memref<1xi32, #tpu.memory_space<smem>>
    %3 = arith.cmpi sle, %arg1, %2 : i32
    %4 = arith.extui %3 : i1 to i32
    %c0_i32 = arith.constant 0 : i32
    %5 = arith.cmpi ne, %4, %c0_i32 : i32
    scf.if %5 {
      %c16_i32_2 = arith.constant 16 : i32
      %9 = arith.muli %arg1, %c16_i32_2 : i32
      %10 = tpu.iota {dimensions = array<i32: 0>} : vector<8x128xi32>
      %c0_i32_3 = arith.constant 0 : i32
      %11 = arith.addi %0, %c0_i32_3 : i32
      %12 = arith.index_cast %11 : i32 to index
      %13 = memref.load %arg2[%12] : memref<16xi32, #tpu.memory_space<smem>>
      %14 = arith.cmpi slt, %9, %13 : i32
      %15 = arith.extui %14 : i1 to i32
      %c0_i32_4 = arith.constant 0 : i32
      %16 = arith.cmpi ne, %15, %c0_i32_4 : i32
      scf.if %16 {
        %c0 = arith.constant 0 : index
        %c0_20 = arith.constant 0 : index
        %c0_21 = arith.constant 0 : index
        %107 = vector.load %arg5[%c0, %c0_20, %c0_21] : memref<16x16x8xf32, #tpu.memory_space<vmem>>, vector<1x16x8xf32>
        %108 = vector.shape_cast %107 : vector<1x16x8xf32> to vector<16x8xf32>
        %cst = arith.constant dense<0xFF800000> : vector<16xf32>
        %109 = vector.multi_reduction <maximumf>, %108, %cst [1] : vector<16x8xf32> to vector<16xf32>
        %110 = vector.shape_cast %109 : vector<16xf32> to vector<16x1xf32>
        %111 = vector.broadcast %110 : vector<16x1xf32> to vector<16x8xf32>
        %112 = arith.subf %108, %111 : vector<16x8xf32>
        %113 = math.exp %112 : vector<16x8xf32>
        %cst_22 = arith.constant dense<0.000000e+00> : vector<16xf32>
        %114 = vector.multi_reduction <add>, %113, %cst_22 [1] : vector<16x8xf32> to vector<16xf32>
        %115 = vector.shape_cast %114 : vector<16xf32> to vector<16x1xf32>
        %116 = math.log %115 : vector<16x1xf32>
        %c0_23 = arith.constant 0 : index
        %c0_24 = arith.constant 0 : index
        %117 = vector.load %arg6[%c0_23, %c0_24] : memref<16x128xi32, #tpu.memory_space<vmem>>, vector<1x128xi32>
        %118 = vector.broadcast %117 : vector<1x128xi32> to vector<8x128xi32>
        %119 = arith.cmpi eq, %10, %118 : vector<8x128xi32>
        %120 = arith.extui %119 : vector<8x128xi1> to vector<8x128xi32>
        %121 = arith.sitofp %120 : vector<8x128xi32> to vector<8x128xf32>
        %cst_25 = arith.constant dense<0.000000e+00> : vector<16x128xf32>
        %122 = tpu.matmul %108, %121, %cst_25 {dimension_numbers = #tpu.dot_dimension_numbers<[1], [0], [0], [1], [0, 0, 1, 1], [], []>} : vector<16x8xf32>, vector<8x128xf32>, vector<16x128xf32> -> vector<16x128xf32>
        %c0_i32_26 = arith.constant 0 : i32
        %123 = arith.addi %c0_i32_26, %9 : i32
        %124 = tpu.assume_multiple %123, 8 : i32
        %125 = arith.addf %110, %116 : vector<16x1xf32>
        %126 = vector.broadcast %125 : vector<16x1xf32> to vector<16x128xf32>
        %127 = arith.subf %122, %126 : vector<16x128xf32>
        %128 = arith.index_cast %124 : i32 to index
        %c0_27 = arith.constant 0 : index
        %129 = vector.load %arg10[%128, %c0_27] : memref<256x128xf32, #tpu.memory_space<vmem>>, vector<16x128xf32>
        tpu.vector_store %arg10[%128, %c0_27], %127 {strides = array<i32>} : memref<256x128xf32, #tpu.memory_space<vmem>>, vector<16x128xf32>,
      } else {
      }
      %c1_i32 = arith.constant 1 : i32
      %17 = arith.addi %0, %c1_i32 : i32
      %18 = arith.index_cast %17 : i32 to index
      %19 = memref.load %arg2[%18] : memref<16xi32, #tpu.memory_space<smem>>
      %20 = arith.cmpi slt, %9, %19 : i32
      %21 = arith.extui %20 : i1 to i32
      %c0_i32_5 = arith.constant 0 : i32
      %22 = arith.cmpi ne, %21, %c0_i32_5 : i32
      scf.if %22 {
        %c1 = arith.constant 1 : index
        %c0 = arith.constant 0 : index
        %c0_20 = arith.constant 0 : index
        %107 = vector.load %arg5[%c1, %c0, %c0_20] : memref<16x16x8xf32, #tpu.memory_space<vmem>>, vector<1x16x8xf32>
        %108 = vector.shape_cast %107 : vector<1x16x8xf32> to vector<16x8xf32>
        %cst = arith.constant dense<0xFF800000> : vector<16xf32>
        %109 = vector.multi_reduction <maximumf>, %108, %cst [1] : vector<16x8xf32> to vector<16xf32>
        %110 = vector.shape_cast %109 : vector<16xf32> to vector<16x1xf32>
        %111 = vector.broadcast %110 : vector<16x1xf32> to vector<16x8xf32>
        %112 = arith.subf %108, %111 : vector<16x8xf32>
        %113 = math.exp %112 : vector<16x8xf32>
        %cst_21 = arith.constant dense<0.000000e+00> : vector<16xf32>
        %114 = vector.multi_reduction <add>, %113, %cst_21 [1] : vector<16x8xf32> to vector<16xf32>
        %115 = vector.shape_cast %114 : vector<16xf32> to vector<16x1xf32>
        %116 = math.log %115 : vector<16x1xf32>
        %c1_22 = arith.constant 1 : index
        %c0_23 = arith.constant 0 : index
        %117 = vector.load %arg6[%c1_22, %c0_23] : memref<16x128xi32, #tpu.memory_space<vmem>>, vector<1x128xi32>
        %118 = vector.broadcast %117 : vector<1x128xi32> to vector<8x128xi32>
        %119 = arith.cmpi eq, %10, %118 : vector<8x128xi32>
        %120 = arith.extui %119 : vector<8x128xi1> to vector<8x128xi32>
        %121 = arith.sitofp %120 : vector<8x128xi32> to vector<8x128xf32>
        %cst_24 = arith.constant dense<0.000000e+00> : vector<16x128xf32>
        %122 = tpu.matmul %108, %121, %cst_24 {dimension_numbers = #tpu.dot_dimension_numbers<[1], [0], [0], [1], [0, 0, 1, 1], [], []>} : vector<16x8xf32>, vector<8x128xf32>, vector<16x128xf32> -> vector<16x128xf32>
        %c16_i32_25 = arith.constant 16 : i32
        %123 = arith.addi %c16_i32_25, %9 : i32
        %124 = tpu.assume_multiple %123, 8 : i32
        %125 = arith.addf %110, %116 : vector<16x1xf32>
        %126 = vector.broadcast %125 : vector<16x1xf32> to vector<16x128xf32>
        %127 = arith.subf %122, %126 : vector<16x128xf32>
        %128 = arith.index_cast %124 : i32 to index
        %c0_26 = arith.constant 0 : index
        %129 = vector.load %arg10[%128, %c0_26] : memref<256x128xf32, #tpu.memory_space<vmem>>, vector<16x128xf32>
        tpu.vector_store %arg10[%128, %c0_26], %127 {strides = array<i32>} : memref<256x128xf32, #tpu.memory_space<vmem>>, vector<16x128xf32>,
      } else {
      }
      %c2_i32 = arith.constant 2 : i32
      %23 = arith.addi %0, %c2_i32 : i32
      %24 = arith.index_cast %23 : i32 to index
      %25 = memref.load %arg2[%24] : memref<16xi32, #tpu.memory_space<smem>>
      %26 = arith.cmpi slt, %9, %25 : i32
      %27 = arith.extui %26 : i1 to i32
      %c0_i32_6 = arith.constant 0 : i32
      %28 = arith.cmpi ne, %27, %c0_i32_6 : i32
      scf.if %28 {
        %c2 = arith.constant 2 : index
        %c0 = arith.constant 0 : index
        %c0_20 = arith.constant 0 : index
        %107 = vector.load %arg5[%c2, %c0, %c0_20] : memref<16x16x8xf32, #tpu.memory_space<vmem>>, vector<1x16x8xf32>
        %108 = vector.shape_cast %107 : vector<1x16x8xf32> to vector<16x8xf32>
        %cst = arith.constant dense<0xFF800000> : vector<16xf32>
        %109 = vector.multi_reduction <maximumf>, %108, %cst [1] : vector<16x8xf32> to vector<16xf32>
        %110 = vector.shape_cast %109 : vector<16xf32> to vector<16x1xf32>
        %111 = vector.broadcast %110 : vector<16x1xf32> to vector<16x8xf32>
        %112 = arith.subf %108, %111 : vector<16x8xf32>
        %113 = math.exp %112 : vector<16x8xf32>
        %cst_21 = arith.constant dense<0.000000e+00> : vector<16xf32>
        %114 = vector.multi_reduction <add>, %113, %cst_21 [1] : vector<16x8xf32> to vector<16xf32>
        %115 = vector.shape_cast %114 : vector<16xf32> to vector<16x1xf32>
        %116 = math.log %115 : vector<16x1xf32>
        %c2_22 = arith.constant 2 : index
        %c0_23 = arith.constant 0 : index
        %117 = vector.load %arg6[%c2_22, %c0_23] : memref<16x128xi32, #tpu.memory_space<vmem>>, vector<1x128xi32>
        %118 = vector.broadcast %117 : vector<1x128xi32> to vector<8x128xi32>
        %119 = arith.cmpi eq, %10, %118 : vector<8x128xi32>
        %120 = arith.extui %119 : vector<8x128xi1> to vector<8x128xi32>
        %121 = arith.sitofp %120 : vector<8x128xi32> to vector<8x128xf32>
        %cst_24 = arith.constant dense<0.000000e+00> : vector<16x128xf32>
        %122 = tpu.matmul %108, %121, %cst_24 {dimension_numbers = #tpu.dot_dimension_numbers<[1], [0], [0], [1], [0, 0, 1, 1], [], []>} : vector<16x8xf32>, vector<8x128xf32>, vector<16x128xf32> -> vector<16x128xf32>
        %c32_i32 = arith.constant 32 : i32
        %123 = arith.addi %c32_i32, %9 : i32
        %124 = tpu.assume_multiple %123, 8 : i32
        %125 = arith.addf %110, %116 : vector<16x1xf32>
        %126 = vector.broadcast %125 : vector<16x1xf32> to vector<16x128xf32>
        %127 = arith.subf %122, %126 : vector<16x128xf32>
        %128 = arith.index_cast %124 : i32 to index
        %c0_25 = arith.constant 0 : index
        %129 = vector.load %arg10[%128, %c0_25] : memref<256x128xf32, #tpu.memory_space<vmem>>, vector<16x128xf32>
        tpu.vector_store %arg10[%128, %c0_25], %127 {strides = array<i32>} : memref<256x128xf32, #tpu.memory_space<vmem>>, vector<16x128xf32>,
      } else {
      }
      %c3_i32 = arith.constant 3 : i32
      %29 = arith.addi %0, %c3_i32 : i32
      %30 = arith.index_cast %29 : i32 to index
      %31 = memref.load %arg2[%30] : memref<16xi32, #tpu.memory_space<smem>>
      %32 = arith.cmpi slt, %9, %31 : i32
      %33 = arith.extui %32 : i1 to i32
      %c0_i32_7 = arith.constant 0 : i32
      %34 = arith.cmpi ne, %33, %c0_i32_7 : i32
      scf.if %34 {
        %c3 = arith.constant 3 : index
        %c0 = arith.constant 0 : index
        %c0_20 = arith.constant 0 : index
        %107 = vector.load %arg5[%c3, %c0, %c0_20] : memref<16x16x8xf32, #tpu.memory_space<vmem>>, vector<1x16x8xf32>
        %108 = vector.shape_cast %107 : vector<1x16x8xf32> to vector<16x8xf32>
        %cst = arith.constant dense<0xFF800000> : vector<16xf32>
        %109 = vector.multi_reduction <maximumf>, %108, %cst [1] : vector<16x8xf32> to vector<16xf32>
        %110 = vector.shape_cast %109 : vector<16xf32> to vector<16x1xf32>
        %111 = vector.broadcast %110 : vector<16x1xf32> to vector<16x8xf32>
        %112 = arith.subf %108, %111 : vector<16x8xf32>
        %113 = math.exp %112 : vector<16x8xf32>
        %cst_21 = arith.constant dense<0.000000e+00> : vector<16xf32>
        %114 = vector.multi_reduction <add>, %113, %cst_21 [1] : vector<16x8xf32> to vector<16xf32>
        %115 = vector.shape_cast %114 : vector<16xf32> to vector<16x1xf32>
        %116 = math.log %115 : vector<16x1xf32>
        %c3_22 = arith.constant 3 : index
        %c0_23 = arith.constant 0 : index
        %117 = vector.load %arg6[%c3_22, %c0_23] : memref<16x128xi32, #tpu.memory_space<vmem>>, vector<1x128xi32>
        %118 = vector.broadcast %117 : vector<1x128xi32> to vector<8x128xi32>
        %119 = arith.cmpi eq, %10, %118 : vector<8x128xi32>
        %120 = arith.extui %119 : vector<8x128xi1> to vector<8x128xi32>
        %121 = arith.sitofp %120 : vector<8x128xi32> to vector<8x128xf32>
        %cst_24 = arith.constant dense<0.000000e+00> : vector<16x128xf32>
        %122 = tpu.matmul %108, %121, %cst_24 {dimension_numbers = #tpu.dot_dimension_numbers<[1], [0], [0], [1], [0, 0, 1, 1], [], []>} : vector<16x8xf32>, vector<8x128xf32>, vector<16x128xf32> -> vector<16x128xf32>
        %c48_i32 = arith.constant 48 : i32
        %123 = arith.addi %c48_i32, %9 : i32
        %124 = tpu.assume_multiple %123, 8 : i32
        %125 = arith.addf %110, %116 : vector<16x1xf32>
        %126 = vector.broadcast %125 : vector<16x1xf32> to vector<16x128xf32>
        %127 = arith.subf %122, %126 : vector<16x128xf32>
        %128 = arith.index_cast %124 : i32 to index
        %c0_25 = arith.constant 0 : index
        %129 = vector.load %arg10[%128, %c0_25] : memref<256x128xf32, #tpu.memory_space<vmem>>, vector<16x128xf32>
        tpu.vector_store %arg10[%128, %c0_25], %127 {strides = array<i32>} : memref<256x128xf32, #tpu.memory_space<vmem>>, vector<16x128xf32>,
      } else {
      }
      %c4_i32 = arith.constant 4 : i32
      %35 = arith.addi %0, %c4_i32 : i32
      %36 = arith.index_cast %35 : i32 to index
      %37 = memref.load %arg2[%36] : memref<16xi32, #tpu.memory_space<smem>>
      %38 = arith.cmpi slt, %9, %37 : i32
      %39 = arith.extui %38 : i1 to i32
      %c0_i32_8 = arith.constant 0 : i32
      %40 = arith.cmpi ne, %39, %c0_i32_8 : i32
      scf.if %40 {
        %c4 = arith.constant 4 : index
        %c0 = arith.constant 0 : index
        %c0_20 = arith.constant 0 : index
        %107 = vector.load %arg5[%c4, %c0, %c0_20] : memref<16x16x8xf32, #tpu.memory_space<vmem>>, vector<1x16x8xf32>
        %108 = vector.shape_cast %107 : vector<1x16x8xf32> to vector<16x8xf32>
        %cst = arith.constant dense<0xFF800000> : vector<16xf32>
        %109 = vector.multi_reduction <maximumf>, %108, %cst [1] : vector<16x8xf32> to vector<16xf32>
        %110 = vector.shape_cast %109 : vector<16xf32> to vector<16x1xf32>
        %111 = vector.broadcast %110 : vector<16x1xf32> to vector<16x8xf32>
        %112 = arith.subf %108, %111 : vector<16x8xf32>
        %113 = math.exp %112 : vector<16x8xf32>
        %cst_21 = arith.constant dense<0.000000e+00> : vector<16xf32>
        %114 = vector.multi_reduction <add>, %113, %cst_21 [1] : vector<16x8xf32> to vector<16xf32>
        %115 = vector.shape_cast %114 : vector<16xf32> to vector<16x1xf32>
        %116 = math.log %115 : vector<16x1xf32>
        %c4_22 = arith.constant 4 : index
        %c0_23 = arith.constant 0 : index
        %117 = vector.load %arg6[%c4_22, %c0_23] : memref<16x128xi32, #tpu.memory_space<vmem>>, vector<1x128xi32>
        %118 = vector.broadcast %117 : vector<1x128xi32> to vector<8x128xi32>
        %119 = arith.cmpi eq, %10, %118 : vector<8x128xi32>
        %120 = arith.extui %119 : vector<8x128xi1> to vector<8x128xi32>
        %121 = arith.sitofp %120 : vector<8x128xi32> to vector<8x128xf32>
        %cst_24 = arith.constant dense<0.000000e+00> : vector<16x128xf32>
        %122 = tpu.matmul %108, %121, %cst_24 {dimension_numbers = #tpu.dot_dimension_numbers<[1], [0], [0], [1], [0, 0, 1, 1], [], []>} : vector<16x8xf32>, vector<8x128xf32>, vector<16x128xf32> -> vector<16x128xf32>
        %c64_i32 = arith.constant 64 : i32
        %123 = arith.addi %c64_i32, %9 : i32
        %124 = tpu.assume_multiple %123, 8 : i32
        %125 = arith.addf %110, %116 : vector<16x1xf32>
        %126 = vector.broadcast %125 : vector<16x1xf32> to vector<16x128xf32>
        %127 = arith.subf %122, %126 : vector<16x128xf32>
        %128 = arith.index_cast %124 : i32 to index
        %c0_25 = arith.constant 0 : index
        %129 = vector.load %arg10[%128, %c0_25] : memref<256x128xf32, #tpu.memory_space<vmem>>, vector<16x128xf32>
        tpu.vector_store %arg10[%128, %c0_25], %127 {strides = array<i32>} : memref<256x128xf32, #tpu.memory_space<vmem>>, vector<16x128xf32>,
      } else {
      }
      %c5_i32 = arith.constant 5 : i32
      %41 = arith.addi %0, %c5_i32 : i32
      %42 = arith.index_cast %41 : i32 to index
      %43 = memref.load %arg2[%42] : memref<16xi32, #tpu.memory_space<smem>>
      %44 = arith.cmpi slt, %9, %43 : i32
      %45 = arith.extui %44 : i1 to i32
      %c0_i32_9 = arith.constant 0 : i32
      %46 = arith.cmpi ne, %45, %c0_i32_9 : i32
      scf.if %46 {
        %c5 = arith.constant 5 : index
        %c0 = arith.constant 0 : index
        %c0_20 = arith.constant 0 : index
        %107 = vector.load %arg5[%c5, %c0, %c0_20] : memref<16x16x8xf32, #tpu.memory_space<vmem>>, vector<1x16x8xf32>
        %108 = vector.shape_cast %107 : vector<1x16x8xf32> to vector<16x8xf32>
        %cst = arith.constant dense<0xFF800000> : vector<16xf32>
        %109 = vector.multi_reduction <maximumf>, %108, %cst [1] : vector<16x8xf32> to vector<16xf32>
        %110 = vector.shape_cast %109 : vector<16xf32> to vector<16x1xf32>
        %111 = vector.broadcast %110 : vector<16x1xf32> to vector<16x8xf32>
        %112 = arith.subf %108, %111 : vector<16x8xf32>
        %113 = math.exp %112 : vector<16x8xf32>
        %cst_21 = arith.constant dense<0.000000e+00> : vector<16xf32>
        %114 = vector.multi_reduction <add>, %113, %cst_21 [1] : vector<16x8xf32> to vector<16xf32>
        %115 = vector.shape_cast %114 : vector<16xf32> to vector<16x1xf32>
        %116 = math.log %115 : vector<16x1xf32>
        %c5_22 = arith.constant 5 : index
        %c0_23 = arith.constant 0 : index
        %117 = vector.load %arg6[%c5_22, %c0_23] : memref<16x128xi32, #tpu.memory_space<vmem>>, vector<1x128xi32>
        %118 = vector.broadcast %117 : vector<1x128xi32> to vector<8x128xi32>
        %119 = arith.cmpi eq, %10, %118 : vector<8x128xi32>
        %120 = arith.extui %119 : vector<8x128xi1> to vector<8x128xi32>
        %121 = arith.sitofp %120 : vector<8x128xi32> to vector<8x128xf32>
        %cst_24 = arith.constant dense<0.000000e+00> : vector<16x128xf32>
        %122 = tpu.matmul %108, %121, %cst_24 {dimension_numbers = #tpu.dot_dimension_numbers<[1], [0], [0], [1], [0, 0, 1, 1], [], []>} : vector<16x8xf32>, vector<8x128xf32>, vector<16x128xf32> -> vector<16x128xf32>
        %c80_i32 = arith.constant 80 : i32
        %123 = arith.addi %c80_i32, %9 : i32
        %124 = tpu.assume_multiple %123, 8 : i32
        %125 = arith.addf %110, %116 : vector<16x1xf32>
        %126 = vector.broadcast %125 : vector<16x1xf32> to vector<16x128xf32>
        %127 = arith.subf %122, %126 : vector<16x128xf32>
        %128 = arith.index_cast %124 : i32 to index
        %c0_25 = arith.constant 0 : index
        %129 = vector.load %arg10[%128, %c0_25] : memref<256x128xf32, #tpu.memory_space<vmem>>, vector<16x128xf32>
        tpu.vector_store %arg10[%128, %c0_25], %127 {strides = array<i32>} : memref<256x128xf32, #tpu.memory_space<vmem>>, vector<16x128xf32>,
      } else {
      }
      %c6_i32 = arith.constant 6 : i32
      %47 = arith.addi %0, %c6_i32 : i32
      %48 = arith.index_cast %47 : i32 to index
      %49 = memref.load %arg2[%48] : memref<16xi32, #tpu.memory_space<smem>>
      %50 = arith.cmpi slt, %9, %49 : i32
      %51 = arith.extui %50 : i1 to i32
      %c0_i32_10 = arith.constant 0 : i32
      %52 = arith.cmpi ne, %51, %c0_i32_10 : i32
      scf.if %52 {
        %c6 = arith.constant 6 : index
        %c0 = arith.constant 0 : index
        %c0_20 = arith.constant 0 : index
        %107 = vector.load %arg5[%c6, %c0, %c0_20] : memref<16x16x8xf32, #tpu.memory_space<vmem>>, vector<1x16x8xf32>
        %108 = vector.shape_cast %107 : vector<1x16x8xf32> to vector<16x8xf32>
        %cst = arith.constant dense<0xFF800000> : vector<16xf32>
        %109 = vector.multi_reduction <maximumf>, %108, %cst [1] : vector<16x8xf32> to vector<16xf32>
        %110 = vector.shape_cast %109 : vector<16xf32> to vector<16x1xf32>
        %111 = vector.broadcast %110 : vector<16x1xf32> to vector<16x8xf32>
        %112 = arith.subf %108, %111 : vector<16x8xf32>
        %113 = math.exp %112 : vector<16x8xf32>
        %cst_21 = arith.constant dense<0.000000e+00> : vector<16xf32>
        %114 = vector.multi_reduction <add>, %113, %cst_21 [1] : vector<16x8xf32> to vector<16xf32>
        %115 = vector.shape_cast %114 : vector<16xf32> to vector<16x1xf32>
        %116 = math.log %115 : vector<16x1xf32>
        %c6_22 = arith.constant 6 : index
        %c0_23 = arith.constant 0 : index
        %117 = vector.load %arg6[%c6_22, %c0_23] : memref<16x128xi32, #tpu.memory_space<vmem>>, vector<1x128xi32>
        %118 = vector.broadcast %117 : vector<1x128xi32> to vector<8x128xi32>
        %119 = arith.cmpi eq, %10, %118 : vector<8x128xi32>
        %120 = arith.extui %119 : vector<8x128xi1> to vector<8x128xi32>
        %121 = arith.sitofp %120 : vector<8x128xi32> to vector<8x128xf32>
        %cst_24 = arith.constant dense<0.000000e+00> : vector<16x128xf32>
        %122 = tpu.matmul %108, %121, %cst_24 {dimension_numbers = #tpu.dot_dimension_numbers<[1], [0], [0], [1], [0, 0, 1, 1], [], []>} : vector<16x8xf32>, vector<8x128xf32>, vector<16x128xf32> -> vector<16x128xf32>
        %c96_i32 = arith.constant 96 : i32
        %123 = arith.addi %c96_i32, %9 : i32
        %124 = tpu.assume_multiple %123, 8 : i32
        %125 = arith.addf %110, %116 : vector<16x1xf32>
        %126 = vector.broadcast %125 : vector<16x1xf32> to vector<16x128xf32>
        %127 = arith.subf %122, %126 : vector<16x128xf32>
        %128 = arith.index_cast %124 : i32 to index
        %c0_25 = arith.constant 0 : index
        %129 = vector.load %arg10[%128, %c0_25] : memref<256x128xf32, #tpu.memory_space<vmem>>, vector<16x128xf32>
        tpu.vector_store %arg10[%128, %c0_25], %127 {strides = array<i32>} : memref<256x128xf32, #tpu.memory_space<vmem>>, vector<16x128xf32>,
      } else {
      }
      %c7_i32 = arith.constant 7 : i32
      %53 = arith.addi %0, %c7_i32 : i32
      %54 = arith.index_cast %53 : i32 to index
      %55 = memref.load %arg2[%54] : memref<16xi32, #tpu.memory_space<smem>>
      %56 = arith.cmpi slt, %9, %55 : i32
      %57 = arith.extui %56 : i1 to i32
      %c0_i32_11 = arith.constant 0 : i32
      %58 = arith.cmpi ne, %57, %c0_i32_11 : i32
      scf.if %58 {
        %c7 = arith.constant 7 : index
        %c0 = arith.constant 0 : index
        %c0_20 = arith.constant 0 : index
        %107 = vector.load %arg5[%c7, %c0, %c0_20] : memref<16x16x8xf32, #tpu.memory_space<vmem>>, vector<1x16x8xf32>
        %108 = vector.shape_cast %107 : vector<1x16x8xf32> to vector<16x8xf32>
        %cst = arith.constant dense<0xFF800000> : vector<16xf32>
        %109 = vector.multi_reduction <maximumf>, %108, %cst [1] : vector<16x8xf32> to vector<16xf32>
        %110 = vector.shape_cast %109 : vector<16xf32> to vector<16x1xf32>
        %111 = vector.broadcast %110 : vector<16x1xf32> to vector<16x8xf32>
        %112 = arith.subf %108, %111 : vector<16x8xf32>
        %113 = math.exp %112 : vector<16x8xf32>
        %cst_21 = arith.constant dense<0.000000e+00> : vector<16xf32>
        %114 = vector.multi_reduction <add>, %113, %cst_21 [1] : vector<16x8xf32> to vector<16xf32>
        %115 = vector.shape_cast %114 : vector<16xf32> to vector<16x1xf32>
        %116 = math.log %115 : vector<16x1xf32>
        %c7_22 = arith.constant 7 : index
        %c0_23 = arith.constant 0 : index
        %117 = vector.load %arg6[%c7_22, %c0_23] : memref<16x128xi32, #tpu.memory_space<vmem>>, vector<1x128xi32>
        %118 = vector.broadcast %117 : vector<1x128xi32> to vector<8x128xi32>
        %119 = arith.cmpi eq, %10, %118 : vector<8x128xi32>
        %120 = arith.extui %119 : vector<8x128xi1> to vector<8x128xi32>
        %121 = arith.sitofp %120 : vector<8x128xi32> to vector<8x128xf32>
        %cst_24 = arith.constant dense<0.000000e+00> : vector<16x128xf32>
        %122 = tpu.matmul %108, %121, %cst_24 {dimension_numbers = #tpu.dot_dimension_numbers<[1], [0], [0], [1], [0, 0, 1, 1], [], []>} : vector<16x8xf32>, vector<8x128xf32>, vector<16x128xf32> -> vector<16x128xf32>
        %c112_i32 = arith.constant 112 : i32
        %123 = arith.addi %c112_i32, %9 : i32
        %124 = tpu.assume_multiple %123, 8 : i32
        %125 = arith.addf %110, %116 : vector<16x1xf32>
        %126 = vector.broadcast %125 : vector<16x1xf32> to vector<16x128xf32>
        %127 = arith.subf %122, %126 : vector<16x128xf32>
        %128 = arith.index_cast %124 : i32 to index
        %c0_25 = arith.constant 0 : index
        %129 = vector.load %arg10[%128, %c0_25] : memref<256x128xf32, #tpu.memory_space<vmem>>, vector<16x128xf32>
        tpu.vector_store %arg10[%128, %c0_25], %127 {strides = array<i32>} : memref<256x128xf32, #tpu.memory_space<vmem>>, vector<16x128xf32>,
      } else {
      }
      %c8_i32 = arith.constant 8 : i32
      %59 = arith.addi %0, %c8_i32 : i32
      %60 = arith.index_cast %59 : i32 to index
      %61 = memref.load %arg2[%60] : memref<16xi32, #tpu.memory_space<smem>>
      %62 = arith.cmpi slt, %9, %61 : i32
      %63 = arith.extui %62 : i1 to i32
      %c0_i32_12 = arith.constant 0 : i32
      %64 = arith.cmpi ne, %63, %c0_i32_12 : i32
      scf.if %64 {
        %c8 = arith.constant 8 : index
        %c0 = arith.constant 0 : index
        %c0_20 = arith.constant 0 : index
        %107 = vector.load %arg5[%c8, %c0, %c0_20] : memref<16x16x8xf32, #tpu.memory_space<vmem>>, vector<1x16x8xf32>
        %108 = vector.shape_cast %107 : vector<1x16x8xf32> to vector<16x8xf32>
        %cst = arith.constant dense<0xFF800000> : vector<16xf32>
        %109 = vector.multi_reduction <maximumf>, %108, %cst [1] : vector<16x8xf32> to vector<16xf32>
        %110 = vector.shape_cast %109 : vector<16xf32> to vector<16x1xf32>
        %111 = vector.broadcast %110 : vector<16x1xf32> to vector<16x8xf32>
        %112 = arith.subf %108, %111 : vector<16x8xf32>
        %113 = math.exp %112 : vector<16x8xf32>
        %cst_21 = arith.constant dense<0.000000e+00> : vector<16xf32>
        %114 = vector.multi_reduction <add>, %113, %cst_21 [1] : vector<16x8xf32> to vector<16xf32>
        %115 = vector.shape_cast %114 : vector<16xf32> to vector<16x1xf32>
        %116 = math.log %115 : vector<16x1xf32>
        %c8_22 = arith.constant 8 : index
        %c0_23 = arith.constant 0 : index
        %117 = vector.load %arg6[%c8_22, %c0_23] : memref<16x128xi32, #tpu.memory_space<vmem>>, vector<1x128xi32>
        %118 = vector.broadcast %117 : vector<1x128xi32> to vector<8x128xi32>
        %119 = arith.cmpi eq, %10, %118 : vector<8x128xi32>
        %120 = arith.extui %119 : vector<8x128xi1> to vector<8x128xi32>
        %121 = arith.sitofp %120 : vector<8x128xi32> to vector<8x128xf32>
        %cst_24 = arith.constant dense<0.000000e+00> : vector<16x128xf32>
        %122 = tpu.matmul %108, %121, %cst_24 {dimension_numbers = #tpu.dot_dimension_numbers<[1], [0], [0], [1], [0, 0, 1, 1], [], []>} : vector<16x8xf32>, vector<8x128xf32>, vector<16x128xf32> -> vector<16x128xf32>
        %c128_i32 = arith.constant 128 : i32
        %123 = arith.addi %c128_i32, %9 : i32
        %124 = tpu.assume_multiple %123, 8 : i32
        %125 = arith.addf %110, %116 : vector<16x1xf32>
        %126 = vector.broadcast %125 : vector<16x1xf32> to vector<16x128xf32>
        %127 = arith.subf %122, %126 : vector<16x128xf32>
        %128 = arith.index_cast %124 : i32 to index
        %c0_25 = arith.constant 0 : index
        %129 = vector.load %arg10[%128, %c0_25] : memref<256x128xf32, #tpu.memory_space<vmem>>, vector<16x128xf32>
        tpu.vector_store %arg10[%128, %c0_25], %127 {strides = array<i32>} : memref<256x128xf32, #tpu.memory_space<vmem>>, vector<16x128xf32>,
      } else {
      }
      %c9_i32 = arith.constant 9 : i32
      %65 = arith.addi %0, %c9_i32 : i32
      %66 = arith.index_cast %65 : i32 to index
      %67 = memref.load %arg2[%66] : memref<16xi32, #tpu.memory_space<smem>>
      %68 = arith.cmpi slt, %9, %67 : i32
      %69 = arith.extui %68 : i1 to i32
      %c0_i32_13 = arith.constant 0 : i32
      %70 = arith.cmpi ne, %69, %c0_i32_13 : i32
      scf.if %70 {
        %c9 = arith.constant 9 : index
        %c0 = arith.constant 0 : index
        %c0_20 = arith.constant 0 : index
        %107 = vector.load %arg5[%c9, %c0, %c0_20] : memref<16x16x8xf32, #tpu.memory_space<vmem>>, vector<1x16x8xf32>
        %108 = vector.shape_cast %107 : vector<1x16x8xf32> to vector<16x8xf32>
        %cst = arith.constant dense<0xFF800000> : vector<16xf32>
        %109 = vector.multi_reduction <maximumf>, %108, %cst [1] : vector<16x8xf32> to vector<16xf32>
        %110 = vector.shape_cast %109 : vector<16xf32> to vector<16x1xf32>
        %111 = vector.broadcast %110 : vector<16x1xf32> to vector<16x8xf32>
        %112 = arith.subf %108, %111 : vector<16x8xf32>
        %113 = math.exp %112 : vector<16x8xf32>
        %cst_21 = arith.constant dense<0.000000e+00> : vector<16xf32>
        %114 = vector.multi_reduction <add>, %113, %cst_21 [1] : vector<16x8xf32> to vector<16xf32>
        %115 = vector.shape_cast %114 : vector<16xf32> to vector<16x1xf32>
        %116 = math.log %115 : vector<16x1xf32>
        %c9_22 = arith.constant 9 : index
        %c0_23 = arith.constant 0 : index
        %117 = vector.load %arg6[%c9_22, %c0_23] : memref<16x128xi32, #tpu.memory_space<vmem>>, vector<1x128xi32>
        %118 = vector.broadcast %117 : vector<1x128xi32> to vector<8x128xi32>
        %119 = arith.cmpi eq, %10, %118 : vector<8x128xi32>
        %120 = arith.extui %119 : vector<8x128xi1> to vector<8x128xi32>
        %121 = arith.sitofp %120 : vector<8x128xi32> to vector<8x128xf32>
        %cst_24 = arith.constant dense<0.000000e+00> : vector<16x128xf32>
        %122 = tpu.matmul %108, %121, %cst_24 {dimension_numbers = #tpu.dot_dimension_numbers<[1], [0], [0], [1], [0, 0, 1, 1], [], []>} : vector<16x8xf32>, vector<8x128xf32>, vector<16x128xf32> -> vector<16x128xf32>
        %c144_i32 = arith.constant 144 : i32
        %123 = arith.addi %c144_i32, %9 : i32
        %124 = tpu.assume_multiple %123, 8 : i32
        %125 = arith.addf %110, %116 : vector<16x1xf32>
        %126 = vector.broadcast %125 : vector<16x1xf32> to vector<16x128xf32>
        %127 = arith.subf %122, %126 : vector<16x128xf32>
        %128 = arith.index_cast %124 : i32 to index
        %c0_25 = arith.constant 0 : index
        %129 = vector.load %arg10[%128, %c0_25] : memref<256x128xf32, #tpu.memory_space<vmem>>, vector<16x128xf32>
        tpu.vector_store %arg10[%128, %c0_25], %127 {strides = array<i32>} : memref<256x128xf32, #tpu.memory_space<vmem>>, vector<16x128xf32>,
      } else {
      }
      %c10_i32 = arith.constant 10 : i32
      %71 = arith.addi %0, %c10_i32 : i32
      %72 = arith.index_cast %71 : i32 to index
      %73 = memref.load %arg2[%72] : memref<16xi32, #tpu.memory_space<smem>>
      %74 = arith.cmpi slt, %9, %73 : i32
      %75 = arith.extui %74 : i1 to i32
      %c0_i32_14 = arith.constant 0 : i32
      %76 = arith.cmpi ne, %75, %c0_i32_14 : i32
      scf.if %76 {
        %c10 = arith.constant 10 : index
        %c0 = arith.constant 0 : index
        %c0_20 = arith.constant 0 : index
        %107 = vector.load %arg5[%c10, %c0, %c0_20] : memref<16x16x8xf32, #tpu.memory_space<vmem>>, vector<1x16x8xf32>
        %108 = vector.shape_cast %107 : vector<1x16x8xf32> to vector<16x8xf32>
        %cst = arith.constant dense<0xFF800000> : vector<16xf32>
        %109 = vector.multi_reduction <maximumf>, %108, %cst [1] : vector<16x8xf32> to vector<16xf32>
        %110 = vector.shape_cast %109 : vector<16xf32> to vector<16x1xf32>
        %111 = vector.broadcast %110 : vector<16x1xf32> to vector<16x8xf32>
        %112 = arith.subf %108, %111 : vector<16x8xf32>
        %113 = math.exp %112 : vector<16x8xf32>
        %cst_21 = arith.constant dense<0.000000e+00> : vector<16xf32>
        %114 = vector.multi_reduction <add>, %113, %cst_21 [1] : vector<16x8xf32> to vector<16xf32>
        %115 = vector.shape_cast %114 : vector<16xf32> to vector<16x1xf32>
        %116 = math.log %115 : vector<16x1xf32>
        %c10_22 = arith.constant 10 : index
        %c0_23 = arith.constant 0 : index
        %117 = vector.load %arg6[%c10_22, %c0_23] : memref<16x128xi32, #tpu.memory_space<vmem>>, vector<1x128xi32>
        %118 = vector.broadcast %117 : vector<1x128xi32> to vector<8x128xi32>
        %119 = arith.cmpi eq, %10, %118 : vector<8x128xi32>
        %120 = arith.extui %119 : vector<8x128xi1> to vector<8x128xi32>
        %121 = arith.sitofp %120 : vector<8x128xi32> to vector<8x128xf32>
        %cst_24 = arith.constant dense<0.000000e+00> : vector<16x128xf32>
        %122 = tpu.matmul %108, %121, %cst_24 {dimension_numbers = #tpu.dot_dimension_numbers<[1], [0], [0], [1], [0, 0, 1, 1], [], []>} : vector<16x8xf32>, vector<8x128xf32>, vector<16x128xf32> -> vector<16x128xf32>
        %c160_i32 = arith.constant 160 : i32
        %123 = arith.addi %c160_i32, %9 : i32
        %124 = tpu.assume_multiple %123, 8 : i32
        %125 = arith.addf %110, %116 : vector<16x1xf32>
        %126 = vector.broadcast %125 : vector<16x1xf32> to vector<16x128xf32>
        %127 = arith.subf %122, %126 : vector<16x128xf32>
        %128 = arith.index_cast %124 : i32 to index
        %c0_25 = arith.constant 0 : index
        %129 = vector.load %arg10[%128, %c0_25] : memref<256x128xf32, #tpu.memory_space<vmem>>, vector<16x128xf32>
        tpu.vector_store %arg10[%128, %c0_25], %127 {strides = array<i32>} : memref<256x128xf32, #tpu.memory_space<vmem>>, vector<16x128xf32>,
      } else {
      }
      %c11_i32 = arith.constant 11 : i32
      %77 = arith.addi %0, %c11_i32 : i32
      %78 = arith.index_cast %77 : i32 to index
      %79 = memref.load %arg2[%78] : memref<16xi32, #tpu.memory_space<smem>>
      %80 = arith.cmpi slt, %9, %79 : i32
      %81 = arith.extui %80 : i1 to i32
      %c0_i32_15 = arith.constant 0 : i32
      %82 = arith.cmpi ne, %81, %c0_i32_15 : i32
      scf.if %82 {
        %c11 = arith.constant 11 : index
        %c0 = arith.constant 0 : index
        %c0_20 = arith.constant 0 : index
        %107 = vector.load %arg5[%c11, %c0, %c0_20] : memref<16x16x8xf32, #tpu.memory_space<vmem>>, vector<1x16x8xf32>
        %108 = vector.shape_cast %107 : vector<1x16x8xf32> to vector<16x8xf32>
        %cst = arith.constant dense<0xFF800000> : vector<16xf32>
        %109 = vector.multi_reduction <maximumf>, %108, %cst [1] : vector<16x8xf32> to vector<16xf32>
        %110 = vector.shape_cast %109 : vector<16xf32> to vector<16x1xf32>
        %111 = vector.broadcast %110 : vector<16x1xf32> to vector<16x8xf32>
        %112 = arith.subf %108, %111 : vector<16x8xf32>
        %113 = math.exp %112 : vector<16x8xf32>
        %cst_21 = arith.constant dense<0.000000e+00> : vector<16xf32>
        %114 = vector.multi_reduction <add>, %113, %cst_21 [1] : vector<16x8xf32> to vector<16xf32>
        %115 = vector.shape_cast %114 : vector<16xf32> to vector<16x1xf32>
        %116 = math.log %115 : vector<16x1xf32>
        %c11_22 = arith.constant 11 : index
        %c0_23 = arith.constant 0 : index
        %117 = vector.load %arg6[%c11_22, %c0_23] : memref<16x128xi32, #tpu.memory_space<vmem>>, vector<1x128xi32>
        %118 = vector.broadcast %117 : vector<1x128xi32> to vector<8x128xi32>
        %119 = arith.cmpi eq, %10, %118 : vector<8x128xi32>
        %120 = arith.extui %119 : vector<8x128xi1> to vector<8x128xi32>
        %121 = arith.sitofp %120 : vector<8x128xi32> to vector<8x128xf32>
        %cst_24 = arith.constant dense<0.000000e+00> : vector<16x128xf32>
        %122 = tpu.matmul %108, %121, %cst_24 {dimension_numbers = #tpu.dot_dimension_numbers<[1], [0], [0], [1], [0, 0, 1, 1], [], []>} : vector<16x8xf32>, vector<8x128xf32>, vector<16x128xf32> -> vector<16x128xf32>
        %c176_i32 = arith.constant 176 : i32
        %123 = arith.addi %c176_i32, %9 : i32
        %124 = tpu.assume_multiple %123, 8 : i32
        %125 = arith.addf %110, %116 : vector<16x1xf32>
        %126 = vector.broadcast %125 : vector<16x1xf32> to vector<16x128xf32>
        %127 = arith.subf %122, %126 : vector<16x128xf32>
        %128 = arith.index_cast %124 : i32 to index
        %c0_25 = arith.constant 0 : index
        %129 = vector.load %arg10[%128, %c0_25] : memref<256x128xf32, #tpu.memory_space<vmem>>, vector<16x128xf32>
        tpu.vector_store %arg10[%128, %c0_25], %127 {strides = array<i32>} : memref<256x128xf32, #tpu.memory_space<vmem>>, vector<16x128xf32>,
      } else {
      }
      %c12_i32 = arith.constant 12 : i32
      %83 = arith.addi %0, %c12_i32 : i32
      %84 = arith.index_cast %83 : i32 to index
      %85 = memref.load %arg2[%84] : memref<16xi32, #tpu.memory_space<smem>>
      %86 = arith.cmpi slt, %9, %85 : i32
      %87 = arith.extui %86 : i1 to i32
      %c0_i32_16 = arith.constant 0 : i32
      %88 = arith.cmpi ne, %87, %c0_i32_16 : i32
      scf.if %88 {
        %c12 = arith.constant 12 : index
        %c0 = arith.constant 0 : index
        %c0_20 = arith.constant 0 : index
        %107 = vector.load %arg5[%c12, %c0, %c0_20] : memref<16x16x8xf32, #tpu.memory_space<vmem>>, vector<1x16x8xf32>
        %108 = vector.shape_cast %107 : vector<1x16x8xf32> to vector<16x8xf32>
        %cst = arith.constant dense<0xFF800000> : vector<16xf32>
        %109 = vector.multi_reduction <maximumf>, %108, %cst [1] : vector<16x8xf32> to vector<16xf32>
        %110 = vector.shape_cast %109 : vector<16xf32> to vector<16x1xf32>
        %111 = vector.broadcast %110 : vector<16x1xf32> to vector<16x8xf32>
        %112 = arith.subf %108, %111 : vector<16x8xf32>
        %113 = math.exp %112 : vector<16x8xf32>
        %cst_21 = arith.constant dense<0.000000e+00> : vector<16xf32>
        %114 = vector.multi_reduction <add>, %113, %cst_21 [1] : vector<16x8xf32> to vector<16xf32>
        %115 = vector.shape_cast %114 : vector<16xf32> to vector<16x1xf32>
        %116 = math.log %115 : vector<16x1xf32>
        %c12_22 = arith.constant 12 : index
        %c0_23 = arith.constant 0 : index
        %117 = vector.load %arg6[%c12_22, %c0_23] : memref<16x128xi32, #tpu.memory_space<vmem>>, vector<1x128xi32>
        %118 = vector.broadcast %117 : vector<1x128xi32> to vector<8x128xi32>
        %119 = arith.cmpi eq, %10, %118 : vector<8x128xi32>
        %120 = arith.extui %119 : vector<8x128xi1> to vector<8x128xi32>
        %121 = arith.sitofp %120 : vector<8x128xi32> to vector<8x128xf32>
        %cst_24 = arith.constant dense<0.000000e+00> : vector<16x128xf32>
        %122 = tpu.matmul %108, %121, %cst_24 {dimension_numbers = #tpu.dot_dimension_numbers<[1], [0], [0], [1], [0, 0, 1, 1], [], []>} : vector<16x8xf32>, vector<8x128xf32>, vector<16x128xf32> -> vector<16x128xf32>
        %c192_i32 = arith.constant 192 : i32
        %123 = arith.addi %c192_i32, %9 : i32
        %124 = tpu.assume_multiple %123, 8 : i32
        %125 = arith.addf %110, %116 : vector<16x1xf32>
        %126 = vector.broadcast %125 : vector<16x1xf32> to vector<16x128xf32>
        %127 = arith.subf %122, %126 : vector<16x128xf32>
        %128 = arith.index_cast %124 : i32 to index
        %c0_25 = arith.constant 0 : index
        %129 = vector.load %arg10[%128, %c0_25] : memref<256x128xf32, #tpu.memory_space<vmem>>, vector<16x128xf32>
        tpu.vector_store %arg10[%128, %c0_25], %127 {strides = array<i32>} : memref<256x128xf32, #tpu.memory_space<vmem>>, vector<16x128xf32>,
      } else {
      }
      %c13_i32 = arith.constant 13 : i32
      %89 = arith.addi %0, %c13_i32 : i32
      %90 = arith.index_cast %89 : i32 to index
      %91 = memref.load %arg2[%90] : memref<16xi32, #tpu.memory_space<smem>>
      %92 = arith.cmpi slt, %9, %91 : i32
      %93 = arith.extui %92 : i1 to i32
      %c0_i32_17 = arith.constant 0 : i32
      %94 = arith.cmpi ne, %93, %c0_i32_17 : i32
      scf.if %94 {
        %c13 = arith.constant 13 : index
        %c0 = arith.constant 0 : index
        %c0_20 = arith.constant 0 : index
        %107 = vector.load %arg5[%c13, %c0, %c0_20] : memref<16x16x8xf32, #tpu.memory_space<vmem>>, vector<1x16x8xf32>
        %108 = vector.shape_cast %107 : vector<1x16x8xf32> to vector<16x8xf32>
        %cst = arith.constant dense<0xFF800000> : vector<16xf32>
        %109 = vector.multi_reduction <maximumf>, %108, %cst [1] : vector<16x8xf32> to vector<16xf32>
        %110 = vector.shape_cast %109 : vector<16xf32> to vector<16x1xf32>
        %111 = vector.broadcast %110 : vector<16x1xf32> to vector<16x8xf32>
        %112 = arith.subf %108, %111 : vector<16x8xf32>
        %113 = math.exp %112 : vector<16x8xf32>
        %cst_21 = arith.constant dense<0.000000e+00> : vector<16xf32>
        %114 = vector.multi_reduction <add>, %113, %cst_21 [1] : vector<16x8xf32> to vector<16xf32>
        %115 = vector.shape_cast %114 : vector<16xf32> to vector<16x1xf32>
        %116 = math.log %115 : vector<16x1xf32>
        %c13_22 = arith.constant 13 : index
        %c0_23 = arith.constant 0 : index
        %117 = vector.load %arg6[%c13_22, %c0_23] : memref<16x128xi32, #tpu.memory_space<vmem>>, vector<1x128xi32>
        %118 = vector.broadcast %117 : vector<1x128xi32> to vector<8x128xi32>
        %119 = arith.cmpi eq, %10, %118 : vector<8x128xi32>
        %120 = arith.extui %119 : vector<8x128xi1> to vector<8x128xi32>
        %121 = arith.sitofp %120 : vector<8x128xi32> to vector<8x128xf32>
        %cst_24 = arith.constant dense<0.000000e+00> : vector<16x128xf32>
        %122 = tpu.matmul %108, %121, %cst_24 {dimension_numbers = #tpu.dot_dimension_numbers<[1], [0], [0], [1], [0, 0, 1, 1], [], []>} : vector<16x8xf32>, vector<8x128xf32>, vector<16x128xf32> -> vector<16x128xf32>
        %c208_i32 = arith.constant 208 : i32
        %123 = arith.addi %c208_i32, %9 : i32
        %124 = tpu.assume_multiple %123, 8 : i32
        %125 = arith.addf %110, %116 : vector<16x1xf32>
        %126 = vector.broadcast %125 : vector<16x1xf32> to vector<16x128xf32>
        %127 = arith.subf %122, %126 : vector<16x128xf32>
        %128 = arith.index_cast %124 : i32 to index
        %c0_25 = arith.constant 0 : index
        %129 = vector.load %arg10[%128, %c0_25] : memref<256x128xf32, #tpu.memory_space<vmem>>, vector<16x128xf32>
        tpu.vector_store %arg10[%128, %c0_25], %127 {strides = array<i32>} : memref<256x128xf32, #tpu.memory_space<vmem>>, vector<16x128xf32>,
      } else {
      }
      %c14_i32 = arith.constant 14 : i32
      %95 = arith.addi %0, %c14_i32 : i32
      %96 = arith.index_cast %95 : i32 to index
      %97 = memref.load %arg2[%96] : memref<16xi32, #tpu.memory_space<smem>>
      %98 = arith.cmpi slt, %9, %97 : i32
      %99 = arith.extui %98 : i1 to i32
      %c0_i32_18 = arith.constant 0 : i32
      %100 = arith.cmpi ne, %99, %c0_i32_18 : i32
      scf.if %100 {
        %c14 = arith.constant 14 : index
        %c0 = arith.constant 0 : index
        %c0_20 = arith.constant 0 : index
        %107 = vector.load %arg5[%c14, %c0, %c0_20] : memref<16x16x8xf32, #tpu.memory_space<vmem>>, vector<1x16x8xf32>
        %108 = vector.shape_cast %107 : vector<1x16x8xf32> to vector<16x8xf32>
        %cst = arith.constant dense<0xFF800000> : vector<16xf32>
        %109 = vector.multi_reduction <maximumf>, %108, %cst [1] : vector<16x8xf32> to vector<16xf32>
        %110 = vector.shape_cast %109 : vector<16xf32> to vector<16x1xf32>
        %111 = vector.broadcast %110 : vector<16x1xf32> to vector<16x8xf32>
        %112 = arith.subf %108, %111 : vector<16x8xf32>
        %113 = math.exp %112 : vector<16x8xf32>
        %cst_21 = arith.constant dense<0.000000e+00> : vector<16xf32>
        %114 = vector.multi_reduction <add>, %113, %cst_21 [1] : vector<16x8xf32> to vector<16xf32>
        %115 = vector.shape_cast %114 : vector<16xf32> to vector<16x1xf32>
        %116 = math.log %115 : vector<16x1xf32>
        %c14_22 = arith.constant 14 : index
        %c0_23 = arith.constant 0 : index
        %117 = vector.load %arg6[%c14_22, %c0_23] : memref<16x128xi32, #tpu.memory_space<vmem>>, vector<1x128xi32>
        %118 = vector.broadcast %117 : vector<1x128xi32> to vector<8x128xi32>
        %119 = arith.cmpi eq, %10, %118 : vector<8x128xi32>
        %120 = arith.extui %119 : vector<8x128xi1> to vector<8x128xi32>
        %121 = arith.sitofp %120 : vector<8x128xi32> to vector<8x128xf32>
        %cst_24 = arith.constant dense<0.000000e+00> : vector<16x128xf32>
        %122 = tpu.matmul %108, %121, %cst_24 {dimension_numbers = #tpu.dot_dimension_numbers<[1], [0], [0], [1], [0, 0, 1, 1], [], []>} : vector<16x8xf32>, vector<8x128xf32>, vector<16x128xf32> -> vector<16x128xf32>
        %c224_i32 = arith.constant 224 : i32
        %123 = arith.addi %c224_i32, %9 : i32
        %124 = tpu.assume_multiple %123, 8 : i32
        %125 = arith.addf %110, %116 : vector<16x1xf32>
        %126 = vector.broadcast %125 : vector<16x1xf32> to vector<16x128xf32>
        %127 = arith.subf %122, %126 : vector<16x128xf32>
        %128 = arith.index_cast %124 : i32 to index
        %c0_25 = arith.constant 0 : index
        %129 = vector.load %arg10[%128, %c0_25] : memref<256x128xf32, #tpu.memory_space<vmem>>, vector<16x128xf32>
        tpu.vector_store %arg10[%128, %c0_25], %127 {strides = array<i32>} : memref<256x128xf32, #tpu.memory_space<vmem>>, vector<16x128xf32>,
      } else {
      }
      %c15_i32 = arith.constant 15 : i32
      %101 = arith.addi %0, %c15_i32 : i32
      %102 = arith.index_cast %101 : i32 to index
      %103 = memref.load %arg2[%102] : memref<16xi32, #tpu.memory_space<smem>>
      %104 = arith.cmpi slt, %9, %103 : i32
      %105 = arith.extui %104 : i1 to i32
      %c0_i32_19 = arith.constant 0 : i32
      %106 = arith.cmpi ne, %105, %c0_i32_19 : i32
      scf.if %106 {
        %c15 = arith.constant 15 : index
        %c0 = arith.constant 0 : index
        %c0_20 = arith.constant 0 : index
        %107 = vector.load %arg5[%c15, %c0, %c0_20] : memref<16x16x8xf32, #tpu.memory_space<vmem>>, vector<1x16x8xf32>
        %108 = vector.shape_cast %107 : vector<1x16x8xf32> to vector<16x8xf32>
        %cst = arith.constant dense<0xFF800000> : vector<16xf32>
        %109 = vector.multi_reduction <maximumf>, %108, %cst [1] : vector<16x8xf32> to vector<16xf32>
        %110 = vector.shape_cast %109 : vector<16xf32> to vector<16x1xf32>
        %111 = vector.broadcast %110 : vector<16x1xf32> to vector<16x8xf32>
        %112 = arith.subf %108, %111 : vector<16x8xf32>
        %113 = math.exp %112 : vector<16x8xf32>
        %cst_21 = arith.constant dense<0.000000e+00> : vector<16xf32>
        %114 = vector.multi_reduction <add>, %113, %cst_21 [1] : vector<16x8xf32> to vector<16xf32>
        %115 = vector.shape_cast %114 : vector<16xf32> to vector<16x1xf32>
        %116 = math.log %115 : vector<16x1xf32>
        %c15_22 = arith.constant 15 : index
        %c0_23 = arith.constant 0 : index
        %117 = vector.load %arg6[%c15_22, %c0_23] : memref<16x128xi32, #tpu.memory_space<vmem>>, vector<1x128xi32>
        %118 = vector.broadcast %117 : vector<1x128xi32> to vector<8x128xi32>
        %119 = arith.cmpi eq, %10, %118 : vector<8x128xi32>
        %120 = arith.extui %119 : vector<8x128xi1> to vector<8x128xi32>
        %121 = arith.sitofp %120 : vector<8x128xi32> to vector<8x128xf32>
        %cst_24 = arith.constant dense<0.000000e+00> : vector<16x128xf32>
        %122 = tpu.matmul %108, %121, %cst_24 {dimension_numbers = #tpu.dot_dimension_numbers<[1], [0], [0], [1], [0, 0, 1, 1], [], []>} : vector<16x8xf32>, vector<8x128xf32>, vector<16x128xf32> -> vector<16x128xf32>
        %c240_i32 = arith.constant 240 : i32
        %123 = arith.addi %c240_i32, %9 : i32
        %124 = tpu.assume_multiple %123, 8 : i32
        %125 = arith.addf %110, %116 : vector<16x1xf32>
        %126 = vector.broadcast %125 : vector<16x1xf32> to vector<16x128xf32>
        %127 = arith.subf %122, %126 : vector<16x128xf32>
        %128 = arith.index_cast %124 : i32 to index
        %c0_25 = arith.constant 0 : index
        %129 = vector.load %arg10[%128, %c0_25] : memref<256x128xf32, #tpu.memory_space<vmem>>, vector<16x128xf32>
        tpu.vector_store %arg10[%128, %c0_25], %127 {strides = array<i32>} : memref<256x128xf32, #tpu.memory_space<vmem>>, vector<16x128xf32>,
      } else {
      }
    } else {
    }
    %c0_i32_0 = arith.constant 0 : i32
    %6 = arith.cmpi eq, %arg1, %c0_i32_0 : i32
    %7 = arith.extui %6 : i1 to i32
    %c0_i32_1 = arith.constant 0 : i32
    %8 = arith.cmpi ne, %7, %c0_i32_1 : i32
    scf.if %8 {
      %9 = tpu.iota {dimensions = array<i32: 1>} : vector<16x128xi32>
      %cst = arith.constant -1.000000e+30 : f32
      %10 = vector.broadcast %cst : f32 to vector<16x128xf32>
      %c0 = arith.constant 0 : index
      %c0_2 = arith.constant 0 : index
      %11 = vector.load %arg6[%c0, %c0_2] : memref<16x128xi32, #tpu.memory_space<vmem>>, vector<16x128xi32>
      %c1_i32 = arith.constant 1 : i32
      %12 = vector.broadcast %c1_i32 : i32 to vector<16x128xi32>
      %13 = arith.andi %9, %12 : vector<16x128xi32>
      %c1_i32_3 = arith.constant 1 : i32
      %14 = vector.broadcast %c1_i32_3 : i32 to vector<16x128xi32>
      %15 = arith.cmpi eq, %13, %14 : vector<16x128xi32>
      %c3_i32 = arith.constant 3 : i32
      %16 = vector.broadcast %c3_i32 : i32 to vector<16x128xi32>
      %17 = arith.cmpi sge, %9, %16 : vector<16x128xi32>
      %18 = arith.andi %15, %17 : vector<16x128xi1>
      %c0_i32_4 = arith.constant 0 : i32
      %19 = vector.broadcast %c0_i32_4 : i32 to vector<16x128xi32>
      %20 = arith.cmpi ne, %11, %19 : vector<16x128xi32>
      %21 = arith.andi %18, %20 : vector<16x128xi1>
      %c2_i32 = arith.constant 2 : i32
      %22 = tpu.dynamic_rotate %11 by %c2_i32 dim 1 : vector<16x128xi32>, i32 -> vector<16x128xi32>
      %23 = arith.cmpi ne, %11, %22 : vector<16x128xi32>
      %24 = arith.andi %21, %23 : vector<16x128xi1>
      %cst_5 = arith.constant 0.000000e+00 : f32
      %cst_6 = arith.constant -1.000000e+30 : f32
      %25 = vector.broadcast %cst_5 : f32 to vector<16x128xf32>
      %26 = vector.broadcast %cst_6 : f32 to vector<16x128xf32>
      %27 = arith.select %24, %25, %26 : vector<16x128xi1>, vector<16x128xf32>
      %c1_i32_7 = arith.constant 1 : i32
      %28 = vector.broadcast %c1_i32_7 : i32 to vector<16x128xi32>
      %29 = arith.cmpi sge, %9, %28 : vector<16x128xi32>
      %c2_i32_8 = arith.constant 2 : i32
      %30 = vector.broadcast %c2_i32_8 : i32 to vector<16x128xi32>
      %31 = arith.cmpi sge, %9, %30 : vector<16x128xi32>
      %c0_9 = arith.constant 0 : index
      %c0_10 = arith.constant 0 : index
      %32 = vector.load %arg7[%c0_9, %c0_10] : memref<16x1xi32, #tpu.memory_space<vmem>>, vector<16x1xi32>
      %c0_11 = arith.constant 0 : index
      %c0_12 = arith.constant 0 : index
      %33 = vector.load %arg8[%c0_11, %c0_12] : memref<16x1xi32, #tpu.memory_space<vmem>>, vector<16x1xi32>
      %34 = arith.index_cast %arg0 : i32 to index
      %35 = memref.load %arg3[%34] : memref<1xi32, #tpu.memory_space<smem>>
      %c2_i32_13 = arith.constant 2 : i32
      %36 = vector.broadcast %c2_i32_13 : i32 to vector<16x128xi32>
      %37 = arith.cmpi slt, %9, %36 : vector<16x128xi32>
      %c0_14 = arith.constant 0 : index
      %c0_15 = arith.constant 0 : index
      %38 = tpu.strided_load %arg10[%c0_14, %c0_15] {strides = array<i32: 16, 1>} : memref<256x128xf32, #tpu.memory_space<vmem>>, vector<16x128xf32>
      %39 = arith.select %37, %38, %10 : vector<16x128xi1>, vector<16x128xf32>
      %c1_i32_16 = arith.constant 1 : i32
      %40 = arith.subi %35, %c1_i32_16 : i32
      %c1_i32_17 = arith.constant 1 : i32
      %41 = arith.minsi %c1_i32_17, %40 : i32
      %42 = arith.index_cast %41 : i32 to index
      %c0_18 = arith.constant 0 : index
      %43 = tpu.strided_load %arg10[%42, %c0_18] {strides = array<i32: 16, 1>} : memref<256x128xf32, #tpu.memory_space<vmem>>, vector<16x128xf32>
      %c1_i32_19 = arith.constant 1 : i32
      %44 = arith.subi %35, %c1_i32_19 : i32
      %45 = arith.addi %c1_i32_19, %44 : i32
      %c1_i32_20 = arith.constant 1 : i32
      %46:2 = scf.for %arg11 = %c1_i32_19 to %45 step %c1_i32_20 iter_args(%arg12 = %39, %arg13 = %43) -> (vector<16x128xf32>, vector<16x128xf32>)  : i32 {
        %c1_i32_32 = arith.constant 1 : i32
        %79 = arith.addi %arg11, %c1_i32_32 : i32
        %c1_i32_33 = arith.constant 1 : i32
        %80 = arith.subi %35, %c1_i32_33 : i32
        %81 = arith.minsi %79, %80 : i32
        %82 = arith.index_cast %81 : i32 to index
        %c0_34 = arith.constant 0 : index
        %83 = tpu.strided_load %arg10[%82, %c0_34] {strides = array<i32: 16, 1>} : memref<256x128xf32, #tpu.memory_space<vmem>>, vector<16x128xf32>
        %c1_i32_35 = arith.constant 1 : i32
        %84 = tpu.dynamic_rotate %arg12 by %c1_i32_35 dim 1 : vector<16x128xf32>, i32 -> vector<16x128xf32>
        %85 = arith.select %29, %84, %10 : vector<16x128xi1>, vector<16x128xf32>
        %c2_i32_36 = arith.constant 2 : i32
        %86 = tpu.dynamic_rotate %arg12 by %c2_i32_36 dim 1 : vector<16x128xf32>, i32 -> vector<16x128xf32>
        %87 = arith.select %31, %86, %10 : vector<16x128xi1>, vector<16x128xf32>
        %88 = arith.addf %87, %27 : vector<16x128xf32>
        %89 = arith.maximumf %arg12, %85 : vector<16x128xf32>
        %90 = arith.minimumf %arg12, %85 : vector<16x128xf32>
        %91 = arith.maximumf %89, %88 : vector<16x128xf32>
        %92 = arith.minimumf %89, %88 : vector<16x128xf32>
        %93 = arith.subf %92, %91 : vector<16x128xf32>
        %94 = math.exp %93 : vector<16x128xf32>
        %cst_37 = arith.constant 1.000000e+00 : f32
        %95 = vector.broadcast %cst_37 : f32 to vector<16x128xf32>
        %96 = arith.addf %95, %94 : vector<16x128xf32>
        %97 = arith.subf %90, %91 : vector<16x128xf32>
        %98 = math.exp %97 : vector<16x128xf32>
        %99 = arith.addf %96, %98 : vector<16x128xf32>
        %100 = math.log %99 : vector<16x128xf32>
        %101 = arith.addf %100, %91 : vector<16x128xf32>
        %102 = arith.addf %101, %arg13 : vector<16x128xf32>
        %103 = vector.broadcast %arg11 : i32 to vector<16x1xi32>
        %104 = arith.cmpi slt, %103, %32 : vector<16x1xi32>
        %105 = vector.shape_cast %104 : vector<16x1xi1> to vector<16x1xi1>
        %106 = vector.broadcast %105 : vector<16x1xi1> to vector<16x128xi1>
        %107 = arith.select %106, %102, %arg12 : vector<16x128xi1>, vector<16x128xf32>
        scf.yield %107, %83 : vector<16x128xf32>, vector<16x128xf32>
      }
      %c2_i32_21 = arith.constant 2 : i32
      %47 = vector.broadcast %c2_i32_21 : i32 to vector<16x1xi32>
      %48 = arith.muli %47, %33 : vector<16x1xi32>
      %c1_i32_22 = arith.constant 1 : i32
      %49 = vector.broadcast %c1_i32_22 : i32 to vector<16x1xi32>
      %50 = arith.addi %48, %49 : vector<16x1xi32>
      %c1_i32_23 = arith.constant 1 : i32
      %51 = vector.broadcast %c1_i32_23 : i32 to vector<16x1xi32>
      %52 = arith.subi %50, %51 : vector<16x1xi32>
      %53 = vector.broadcast %52 : vector<16x1xi32> to vector<16x128xi32>
      %54 = arith.cmpi eq, %9, %53 : vector<16x128xi32>
      %c2_i32_24 = arith.constant 2 : i32
      %55 = vector.broadcast %c2_i32_24 : i32 to vector<16x1xi32>
      %56 = arith.subi %50, %55 : vector<16x1xi32>
      %57 = vector.broadcast %56 : vector<16x1xi32> to vector<16x128xi32>
      %58 = arith.cmpi eq, %9, %57 : vector<16x128xi32>
      %59 = arith.ori %54, %58 : vector<16x128xi1>
      %60 = arith.select %59, %46#0, %10 : vector<16x128xi1>, vector<16x128xf32>
      %cst_25 = arith.constant dense<0xFF800000> : vector<16xf32>
      %61 = vector.multi_reduction <maximumf>, %60, %cst_25 [1] : vector<16x128xf32> to vector<16xf32>
      %62 = vector.shape_cast %61 : vector<16xf32> to vector<16x1xf32>
      %63 = vector.broadcast %62 : vector<16x1xf32> to vector<16x128xf32>
      %64 = arith.subf %60, %63 : vector<16x128xf32>
      %65 = math.exp %64 : vector<16x128xf32>
      %cst_26 = arith.constant dense<0.000000e+00> : vector<16xf32>
      %66 = vector.multi_reduction <add>, %65, %cst_26 [1] : vector<16x128xf32> to vector<16xf32>
      %67 = vector.shape_cast %66 : vector<16xf32> to vector<16x1xf32>
      %68 = math.log %67 : vector<16x1xf32>
      %69 = arith.addf %68, %62 : vector<16x1xf32>
      %cst_27 = arith.constant -5.000000e+29 : f32
      %70 = vector.broadcast %cst_27 : f32 to vector<16x1xf32>
      %71 = arith.cmpf ole, %62, %70 : vector<16x1xf32>
      %cst_28 = arith.constant 0.000000e+00 : f32
      %72 = vector.broadcast %cst_28 : f32 to vector<16x1xf32>
      %73 = arith.subf %72, %69 : vector<16x1xf32>
      %cst_29 = arith.constant 0x7F800000 : f32
      %74 = vector.broadcast %cst_29 : f32 to vector<16x1xf32>
      %75 = arith.select %71, %74, %73 : vector<16x1xi1>, vector<16x1xf32>
      %76 = vector.shape_cast %75 : vector<16x1xf32> to vector<16x1xf32>
      %77 = vector.broadcast %76 : vector<16x1xf32> to vector<16x128xf32>
      %c0_30 = arith.constant 0 : index
      %c0_31 = arith.constant 0 : index
      %78 = vector.load %arg9[%c0_30, %c0_31] : memref<16x128xf32, #tpu.memory_space<vmem>>, vector<16x128xf32>
      tpu.vector_store %arg9[%c0_30, %c0_31], %77 {strides = array<i32>} : memref<16x128xf32, #tpu.memory_space<vmem>>, vector<16x128xf32>,
    } else {
    }
    return
  }
  func.func @transform_0(%arg0: i32, %arg1: i32, %arg2: memref<16xi32, #tpu.memory_space<smem>>, %arg3: memref<1xi32, #tpu.memory_space<smem>>, %arg4: memref<1xi32, #tpu.memory_space<smem>>) -> (i32, i32, i32) {
    %0 = arith.index_cast %arg0 : i32 to index
    %1 = memref.load %arg4[%0] : memref<1xi32, #tpu.memory_space<smem>>
    %2 = arith.minsi %arg1, %1 : i32
    %c0_i32 = arith.constant 0 : i32
    %c0_i32_0 = arith.constant 0 : i32
    return %arg0, %2, %c0_i32 : i32, i32, i32
  }
  func.func @transform_1(%arg0: i32, %arg1: i32, %arg2: memref<16xi32, #tpu.memory_space<smem>>, %arg3: memref<1xi32, #tpu.memory_space<smem>>, %arg4: memref<1xi32, #tpu.memory_space<smem>>) -> (i32, i32) {
    %c0_i32 = arith.constant 0 : i32
    %c0_i32_0 = arith.constant 0 : i32
    return %arg0, %c0_i32 : i32, i32
  }
  func.func @transform_2(%arg0: i32, %arg1: i32, %arg2: memref<16xi32, #tpu.memory_space<smem>>, %arg3: memref<1xi32, #tpu.memory_space<smem>>, %arg4: memref<1xi32, #tpu.memory_space<smem>>) -> (i32, i32) {
    %c0_i32 = arith.constant 0 : i32
    %c0_i32_0 = arith.constant 0 : i32
    return %arg0, %c0_i32 : i32, i32
  }
  func.func @transform_3(%arg0: i32, %arg1: i32, %arg2: memref<16xi32, #tpu.memory_space<smem>>, %arg3: memref<1xi32, #tpu.memory_space<smem>>, %arg4: memref<1xi32, #tpu.memory_space<smem>>) -> (i32, i32) {
    %c0_i32 = arith.constant 0 : i32
    %c0_i32_0 = arith.constant 0 : i32
    return %arg0, %c0_i32 : i32, i32
  }
  func.func @transform_4(%arg0: i32, %arg1: i32, %arg2: memref<16xi32, #tpu.memory_space<smem>>, %arg3: memref<1xi32, #tpu.memory_space<smem>>, %arg4: memref<1xi32, #tpu.memory_space<smem>>) -> (i32, i32) {
    %c0_i32 = arith.constant 0 : i32
    %c0_i32_0 = arith.constant 0 : i32
    return %arg0, %c0_i32 : i32, i32
  }
}

</mosaic_0001>

<bundles_post_ra>
// kernel: tpu_custom_call.1
= control target key start
LH: loop header
LB: loop body
LE: loop exit
PB: predicated region body
PF: predicated region fallthrough
CT: control target
= control target key end

     0   :  { %s2045_s29 = smov [#allocation4]   ;;  %s2461_s0 = inlined_call_operand.vmem [shape: s32[16], index: 0, kind: input, shape index: {}]   ;;  %s2462_s1 = inlined_call_operand.<no memory space> [shape: s32[1], index: 1, kind: input, shape index: {}]   ;;  %s2463_s2 = inlined_call_operand.<no memory space> [shape: s32[1], index: 2, kind: input, shape index: {}]   ;;  %s2464_s3 = inlined_call_operand.vmem [shape: f32[16,16,8], index: 3, kind: input, shape index: {}]   ;;  %s2465_s4 = inlined_call_operand.vmem [shape: s32[16,128], index: 4, kind: input, shape index: {}]   ;;  %s2466_s5 = inlined_call_operand.vmem [shape: s32[16,1], index: 5, kind: input, shape index: {}]   ;;  %s2467_s6 = inlined_call_operand.vmem [shape: s32[16,1], index: 6, kind: input, shape index: {}]   ;;  %s2468_s7 = inlined_call_operand.hbm [shape: f32[16,128], index: 7, kind: output, shape index: {}]  }
   0x1   :  { %s13_s26 = sshll.u32 %s2461_s0, 4  ;;  %17 = sst [smem:[#allocation5]] %s2462_s1  ;;  %s14_s26 = int_to_ptr.vmem [resolvable:$true] %s13_s26 }
   0x2   :  { %16 = dma.vmem_to_smem %s14_s26, 16, %s2045_s29, [#allocation3] }
   0x3   :  { %2013 = dma.done.wait [#allocation3], 16 }
   0x4   :  { %2014 = vsyncadd [#allocation3], 4294967280 }
   0x5   :  { %21 = sfence }
   0x6   :  { %22 = vsyncpa [#allocation8], 0  ;;  %p1525_p0 = scmp.gt.s32.totalorder %s2463_s2, 0  ;;  %p1529_p2 = scmp.lt.s32.totalorder %s2463_s2, 0 }
   0x7   :  { %s72_s17 = sld [smem:[#allocation4]] (!%p1529_p2) }
   0x8   :  { %s53_s11 = scalar_select %p1525_p0, 0, %s2463_s2 }
   0xa   :  { %s1526_s0 = sshll.u32 %s53_s11, 1 }
   0xb   :  { %p55_p1 = scmp.lt.s32.totalorder %s1526_s0, 1  ;;  %68 = sbr.rel (%p1529_p2) target bundleno = 4504 (0x1198), region = 21 }
   0xd   :  { %s2478_s0 = smov (!%p55_p1, %s1526_s0), 1  ;;  %p1531_p3 = scmp.le.s32.totalorder (!%p1529_p2), %s72_s17, 0 }
   0xe   :  { %s1527_s12 = sshll.u32 %s2478_s0, 3 }
   0xf   :  { %s2126_s14 = scalar_lea.vmem %s2464_s3, %s1527_s12 }
  0x10   :  { %v70_v0 = vlaneseq  ;;  %76 = sbr.rel (%p1531_p3) target bundleno = 289 (0x121), region = 25 }
  0x12   :  { %v2131_v1 = vshrl.u32 %v70_v0, 7 }
  0x15   :  { %v77_v2 = vld [vmem:[%s2126_s14] sm:$0xff]  ;;  %vm79_vm0 = vcmask 64512   ;;  %v78_v4 = vld [vmem:[%s2126_s14 + $0x8] sm:$0xff]  ;;  %v2046_v7 = vmov 1.0  }
  0x16   :  { %v80_v3 = vsel %vm79_vm0, %v77_v2, -inf  ;;  %v83_v5 = vsel %vm79_vm0, %v78_v4, -inf  ;;  %v1781_v6 = vld [vmem:[%s2465_s4] ss:$0 sm:$0xff] }
  0x17   :  { %81 = vmax.xlane.f32.xlu0 %v80_v3  ;;  %vm104_vm1 = vcmp.eq.s32.totalorder %v2131_v1, %v1781_v6 }
  0x18   :  { %1533 = vmatpush.msk.msra.mxu0 %vm104_vm1, %v2046_v7  ;;  %1683 = vmatpush.msk.msra.mxu1 %vm104_vm1, %v2046_v7 }
  0x19   :  { %1534 = vmatmul.msk.f32.vlgmr.msra.gmra.mxu0 %vm79_vm0, %v77_v2  ;;  %1535 = vmatmul.msk.f32.vlgmr.msra.gmra.mxu1 %vm79_vm0, %v78_v4 }
  0x1f   :  { %84 = vmax.xlane.f32.xlu0 %v83_v5 }
  0x8a   :  { %v82_v8 = vpop.xlane.xlu0 %81 }
  0x8b   :  { %v86_v9 = vsub.f32 %v77_v2, %v82_v8 }
  0x8d   :  { %v88_v10 = vmul.f32 1.442695, %v86_v9 }
  0x8f   :  { %1782 = vpow2.f32 %v88_v10 }
  0x92   :  { %v85_v11 = vpop.xlane.xlu0 %84 }
  0x93   :  { %v87_v12 = vsub.f32 %v78_v4, %v85_v11 }
  0x95   :  { %v1783_v13 = vpop.eup %1782  ;;  %v90_v14 = vmul.f32 1.442695, %v87_v12 }
  0x96   :  { %v92_v15 = vsel %vm79_vm0, %v1783_v13, 0.0  ;;  %v130_v22 = vpop.f32.mrf.mxu0  ;;  %v133_v27 = vpop.f32.mrf.mxu1 }
  0x97   :  { %1784 = vpow2.f32 %v90_v14  ;;  %93 = vadd.xlane.f32.xlu1 %v92_v15 }
  0x9d   :  { %v1785_v16 = vpop.eup %1784 }
  0x9e   :  { %v95_v17 = vsel %vm79_vm0, %v1785_v16, 0.0 }
  0x9f   :  { %96 = vadd.xlane.f32.xlu1 %v95_v17 }
 0x10a   :  { %v94_v18 = vpop.xlane.xlu1 %93 }
 0x10b   :  { %1786 = vlog2.f32 %v94_v18 }
 0x111   :  { %v1787_v19 = vpop.eup %1786 }
 0x112   :  { %v99_v20 = vmul.f32 0.6931472, %v1787_v19  ;;  %v97_v21 = vpop.xlane.xlu1 %96 }
 0x113   :  { %1788 = vlog2.f32 %v97_v21 }
 0x114   :  { %v136_v23 = vadd.f32 %v99_v20, %v82_v8 }
 0x116   :  { %v138_v24 = vsub.f32 %v130_v22, %v136_v23 }
 0x118   :  { %141 = vst [vmem:[#allocation2] sm:$0xff] %v138_v24 }
 0x119   :  { %v1789_v25 = vpop.eup %1788 }
 0x11a   :  { %v101_v26 = vmul.f32 0.6931472, %v1789_v25 }
 0x11c   :  { %v137_v28 = vadd.f32 %v101_v26, %v85_v11 }
 0x11e   :  { %v139_v29 = vsub.f32 %v133_v27, %v137_v28 }
 0x120   :  { %142 = vst [vmem:[#allocation2 + $0x8] sm:$0xff] %v139_v29 }
 0x121 PF:  { %s1536_s18 = sld [smem:[#allocation4 + $0x1]] }
 0x127   :  { %p1538_p4 = scmp.le.s32.totalorder %s1536_s18, 0 }
 0x129   :  { %148 = sbr.rel (%p1538_p4) target bundleno = 570 (0x23a), region = 29 }
 0x12e   :  { %v1539_v30 = vld [vmem:[%s2126_s14 + $0x10] sm:$0xff]  ;;  %vm152_vm2 = vcmask 64512   ;;  %v1540_v32 = vld [vmem:[%s2126_s14 + $0x18] sm:$0xff]  ;;  %v1790_v34 = vld [vmem:[%s2465_s4 + $0x1] ss:$0 sm:$0xff]  ;;  %v2047_v35 = vmov 1.0  }
 0x12f   :  { %v153_v31 = vsel %vm152_vm2, %v1539_v30, -inf  ;;  %v156_v33 = vsel %vm152_vm2, %v1540_v32, -inf  ;;  %vm177_vm3 = vcmp.eq.s32.totalorder %v2131_v1, %v1790_v34 }
 0x130   :  { %154 = vmax.xlane.f32.xlu0 %v153_v31  ;;  %1542 = vmatpush.msk.msra.mxu0 %vm177_vm3, %v2047_v35 }
 0x131   :  { %1684 = vmatpush.msk.msra.mxu1 %vm177_vm3, %v2047_v35  ;;  %1543 = vmatmul.msk.f32.vlgmr.msra.gmra.mxu0 %vm152_vm2, %v1539_v30 }
 0x132   :  { %1544 = vmatmul.msk.f32.vlgmr.msra.gmra.mxu1 %vm152_vm2, %v1540_v32 }
 0x138   :  { %157 = vmax.xlane.f32.xlu0 %v156_v33 }
 0x1a3   :  { %v155_v36 = vpop.xlane.xlu0 %154 }
 0x1a4   :  { %v159_v37 = vsub.f32 %v1539_v30, %v155_v36 }
 0x1a6   :  { %v161_v38 = vmul.f32 1.442695, %v159_v37 }
 0x1a8   :  { %1791 = vpow2.f32 %v161_v38 }
 0x1ab   :  { %v158_v39 = vpop.xlane.xlu0 %157 }
 0x1ac   :  { %v160_v40 = vsub.f32 %v1540_v32, %v158_v39 }
 0x1ae   :  { %v1792_v41 = vpop.eup %1791  ;;  %v163_v42 = vmul.f32 1.442695, %v160_v40  ;;  %v203_v50 = vpop.f32.mrf.mxu0 }
 0x1af   :  { %v165_v43 = vsel %vm152_vm2, %v1792_v41, 0.0  ;;  %v206_v55 = vpop.f32.mrf.mxu1 }
 0x1b0   :  { %1793 = vpow2.f32 %v163_v42  ;;  %166 = vadd.xlane.f32.xlu1 %v165_v43 }
 0x1b6   :  { %v1794_v44 = vpop.eup %1793 }
 0x1b7   :  { %v168_v45 = vsel %vm152_vm2, %v1794_v44, 0.0 }
 0x1b8   :  { %169 = vadd.xlane.f32.xlu1 %v168_v45 }
 0x223   :  { %v167_v46 = vpop.xlane.xlu1 %166 }
 0x224   :  { %1795 = vlog2.f32 %v167_v46 }
 0x22a   :  { %v1796_v47 = vpop.eup %1795 }
 0x22b   :  { %v172_v48 = vmul.f32 0.6931472, %v1796_v47  ;;  %v170_v49 = vpop.xlane.xlu1 %169 }
 0x22c   :  { %1797 = vlog2.f32 %v170_v49 }
 0x22d   :  { %v210_v51 = vadd.f32 %v172_v48, %v155_v36 }
 0x22f   :  { %v212_v52 = vsub.f32 %v203_v50, %v210_v51 }
 0x231   :  { %215 = vst [vmem:[#allocation2 + $0x10] sm:$0xff] %v212_v52 }
 0x232   :  { %v1798_v53 = vpop.eup %1797 }
 0x233   :  { %v174_v54 = vmul.f32 0.6931472, %v1798_v53 }
 0x235   :  { %v211_v56 = vadd.f32 %v174_v54, %v158_v39 }
 0x237   :  { %v213_v57 = vsub.f32 %v206_v55, %v211_v56 }
 0x239   :  { %216 = vst [vmem:[#allocation2 + $0x18] sm:$0xff] %v213_v57 }
 0x23a PF:  { %s1545_s21 = sld [smem:[#allocation4 + $0x2]] }
 0x240   :  { %p1547_p5 = scmp.le.s32.totalorder %s1545_s21, 0 }
 0x242   :  { %222 = sbr.rel (%p1547_p5) target bundleno = 851 (0x353), region = 33 }
 0x247   :  { %v1548_v58 = vld [vmem:[%s2126_s14 + $0x20] sm:$0xff]  ;;  %vm226_vm4 = vcmask 64512   ;;  %v1549_v60 = vld [vmem:[%s2126_s14 + $0x28] sm:$0xff]  ;;  %v2048_v63 = vmov 1.0  }
 0x248   :  { %v227_v59 = vsel %vm226_vm4, %v1548_v58, -inf  ;;  %v230_v61 = vsel %vm226_vm4, %v1549_v60, -inf  ;;  %v1799_v62 = vld [vmem:[%s2465_s4 + $0x2] ss:$0 sm:$0xff] }
 0x249   :  { %228 = vmax.xlane.f32.xlu0 %v227_v59  ;;  %vm251_vm5 = vcmp.eq.s32.totalorder %v2131_v1, %v1799_v62 }
 0x24a   :  { %1551 = vmatpush.msk.msra.mxu0 %vm251_vm5, %v2048_v63  ;;  %1685 = vmatpush.msk.msra.mxu1 %vm251_vm5, %v2048_v63 }
 0x24b   :  { %1552 = vmatmul.msk.f32.vlgmr.msra.gmra.mxu0 %vm226_vm4, %v1548_v58  ;;  %1553 = vmatmul.msk.f32.vlgmr.msra.gmra.mxu1 %vm226_vm4, %v1549_v60 }
 0x251   :  { %231 = vmax.xlane.f32.xlu0 %v230_v61 }
 0x2bc   :  { %v229_v0 = vpop.xlane.xlu0 %228 }
 0x2bd   :  { %v233_v2 = vsub.f32 %v1548_v58, %v229_v0 }
 0x2bf   :  { %v235_v3 = vmul.f32 1.442695, %v233_v2 }
 0x2c1   :  { %1800 = vpow2.f32 %v235_v3 }
 0x2c4   :  { %v232_v4 = vpop.xlane.xlu0 %231 }
 0x2c5   :  { %v234_v5 = vsub.f32 %v1549_v60, %v232_v4 }
 0x2c7   :  { %v1801_v6 = vpop.eup %1800  ;;  %v237_v7 = vmul.f32 1.442695, %v234_v5 }
 0x2c8   :  { %v239_v8 = vsel %vm226_vm4, %v1801_v6, 0.0  ;;  %v277_v15 = vpop.f32.mrf.mxu0  ;;  %v280_v20 = vpop.f32.mrf.mxu1 }
 0x2c9   :  { %1802 = vpow2.f32 %v237_v7  ;;  %240 = vadd.xlane.f32.xlu1 %v239_v8 }
 0x2cf   :  { %v1803_v9 = vpop.eup %1802 }
 0x2d0   :  { %v242_v10 = vsel %vm226_vm4, %v1803_v9, 0.0 }
 0x2d1   :  { %243 = vadd.xlane.f32.xlu1 %v242_v10 }
 0x33c   :  { %v241_v11 = vpop.xlane.xlu1 %240 }
 0x33d   :  { %1804 = vlog2.f32 %v241_v11 }
 0x343   :  { %v1805_v12 = vpop.eup %1804 }
 0x344   :  { %v246_v13 = vmul.f32 0.6931472, %v1805_v12  ;;  %v244_v14 = vpop.xlane.xlu1 %243 }
 0x345   :  { %1806 = vlog2.f32 %v244_v14 }
 0x346   :  { %v284_v16 = vadd.f32 %v246_v13, %v229_v0 }
 0x348   :  { %v286_v17 = vsub.f32 %v277_v15, %v284_v16 }
 0x34a   :  { %289 = vst [vmem:[#allocation2 + $0x20] sm:$0xff] %v286_v17 }
 0x34b   :  { %v1807_v18 = vpop.eup %1806 }
 0x34c   :  { %v248_v19 = vmul.f32 0.6931472, %v1807_v18 }
 0x34e   :  { %v285_v21 = vadd.f32 %v248_v19, %v232_v4 }
 0x350   :  { %v287_v22 = vsub.f32 %v280_v20, %v285_v21 }
 0x352   :  { %290 = vst [vmem:[#allocation2 + $0x28] sm:$0xff] %v287_v22 }
 0x353 PF:  { %s1554_s24 = sld [smem:[#allocation4 + $0x3]] }
 0x359   :  { %p1556_p6 = scmp.le.s32.totalorder %s1554_s24, 0 }
 0x35b   :  { %296 = sbr.rel (%p1556_p6) target bundleno = 1132 (0x46c), region = 37 }
 0x360   :  { %v1557_v23 = vld [vmem:[%s2126_s14 + $0x30] sm:$0xff]  ;;  %vm300_vm6 = vcmask 64512   ;;  %v1558_v25 = vld [vmem:[%s2126_s14 + $0x38] sm:$0xff]  ;;  %v1808_v27 = vld [vmem:[%s2465_s4 + $0x3] ss:$0 sm:$0xff]  ;;  %v2049_v28 = vmov 1.0  }
 0x361   :  { %v301_v24 = vsel %vm300_vm6, %v1557_v23, -inf  ;;  %v304_v26 = vsel %vm300_vm6, %v1558_v25, -inf  ;;  %vm325_vm7 = vcmp.eq.s32.totalorder %v2131_v1, %v1808_v27 }
 0x362   :  { %302 = vmax.xlane.f32.xlu0 %v301_v24  ;;  %1560 = vmatpush.msk.msra.mxu0 %vm325_vm7, %v2049_v28 }
 0x363   :  { %1686 = vmatpush.msk.msra.mxu1 %vm325_vm7, %v2049_v28  ;;  %1561 = vmatmul.msk.f32.vlgmr.msra.gmra.mxu0 %vm300_vm6, %v1557_v23 }
 0x364   :  { %1562 = vmatmul.msk.f32.vlgmr.msra.gmra.mxu1 %vm300_vm6, %v1558_v25 }
 0x36a   :  { %305 = vmax.xlane.f32.xlu0 %v304_v26 }
 0x3d5   :  { %v303_v29 = vpop.xlane.xlu0 %302 }
 0x3d6   :  { %v307_v30 = vsub.f32 %v1557_v23, %v303_v29 }
 0x3d8   :  { %v309_v31 = vmul.f32 1.442695, %v307_v30 }
 0x3da   :  { %1809 = vpow2.f32 %v309_v31 }
 0x3dd   :  { %v306_v32 = vpop.xlane.xlu0 %305 }
 0x3de   :  { %v308_v33 = vsub.f32 %v1558_v25, %v306_v32 }
 0x3e0   :  { %v1810_v34 = vpop.eup %1809  ;;  %v311_v35 = vmul.f32 1.442695, %v308_v33  ;;  %v351_v43 = vpop.f32.mrf.mxu0 }
 0x3e1   :  { %v313_v36 = vsel %vm300_vm6, %v1810_v34, 0.0  ;;  %v354_v48 = vpop.f32.mrf.mxu1 }
 0x3e2   :  { %1811 = vpow2.f32 %v311_v35  ;;  %314 = vadd.xlane.f32.xlu1 %v313_v36 }
 0x3e8   :  { %v1812_v37 = vpop.eup %1811 }
 0x3e9   :  { %v316_v38 = vsel %vm300_vm6, %v1812_v37, 0.0 }
 0x3ea   :  { %317 = vadd.xlane.f32.xlu1 %v316_v38 }
 0x455   :  { %v315_v39 = vpop.xlane.xlu1 %314 }
 0x456   :  { %1813 = vlog2.f32 %v315_v39 }
 0x45c   :  { %v1814_v40 = vpop.eup %1813 }
 0x45d   :  { %v320_v41 = vmul.f32 0.6931472, %v1814_v40  ;;  %v318_v42 = vpop.xlane.xlu1 %317 }
 0x45e   :  { %1815 = vlog2.f32 %v318_v42 }
 0x45f   :  { %v358_v44 = vadd.f32 %v320_v41, %v303_v29 }
 0x461   :  { %v360_v45 = vsub.f32 %v351_v43, %v358_v44 }
 0x463   :  { %363 = vst [vmem:[#allocation2 + $0x30] sm:$0xff] %v360_v45 }
 0x464   :  { %v1816_v46 = vpop.eup %1815 }
 0x465   :  { %v322_v47 = vmul.f32 0.6931472, %v1816_v46 }
 0x467   :  { %v359_v49 = vadd.f32 %v322_v47, %v306_v32 }
 0x469   :  { %v361_v50 = vsub.f32 %v354_v48, %v359_v49 }
 0x46b   :  { %364 = vst [vmem:[#allocation2 + $0x38] sm:$0xff] %v361_v50 }
 0x46c PF:  { %s1563_s27 = sld [smem:[#allocation4 + $0x4]] }
 0x472   :  { %p1565_p7 = scmp.le.s32.totalorder %s1563_s27, 0 }
 0x474   :  { %370 = sbr.rel (%p1565_p7) target bundleno = 1413 (0x585), region = 41 }
 0x479   :  { %v1566_v51 = vld [vmem:[%s2126_s14 + $0x40] sm:$0xff]  ;;  %vm374_vm8 = vcmask 64512   ;;  %v1567_v53 = vld [vmem:[%s2126_s14 + $0x48] sm:$0xff]  ;;  %v2050_v56 = vmov 1.0  }
 0x47a   :  { %v375_v52 = vsel %vm374_vm8, %v1566_v51, -inf  ;;  %v378_v54 = vsel %vm374_vm8, %v1567_v53, -inf  ;;  %v1817_v55 = vld [vmem:[%s2465_s4 + $0x4] ss:$0 sm:$0xff] }
 0x47b   :  { %376 = vmax.xlane.f32.xlu0 %v375_v52  ;;  %vm399_vm9 = vcmp.eq.s32.totalorder %v2131_v1, %v1817_v55 }
 0x47c   :  { %1569 = vmatpush.msk.msra.mxu0 %vm399_vm9, %v2050_v56  ;;  %1687 = vmatpush.msk.msra.mxu1 %vm399_vm9, %v2050_v56 }
 0x47d   :  { %1570 = vmatmul.msk.f32.vlgmr.msra.gmra.mxu0 %vm374_vm8, %v1566_v51  ;;  %1571 = vmatmul.msk.f32.vlgmr.msra.gmra.mxu1 %vm374_vm8, %v1567_v53 }
 0x483   :  { %379 = vmax.xlane.f32.xlu0 %v378_v54 }
 0x4ee   :  { %v377_v57 = vpop.xlane.xlu0 %376 }
 0x4ef   :  { %v381_v58 = vsub.f32 %v1566_v51, %v377_v57 }
 0x4f1   :  { %v383_v59 = vmul.f32 1.442695, %v381_v58 }
 0x4f3   :  { %1818 = vpow2.f32 %v383_v59 }
 0x4f6   :  { %v380_v60 = vpop.xlane.xlu0 %379 }
 0x4f7   :  { %v382_v61 = vsub.f32 %v1567_v53, %v380_v60 }
 0x4f9   :  { %v1819_v62 = vpop.eup %1818  ;;  %v385_v63 = vmul.f32 1.442695, %v382_v61 }
 0x4fa   :  { %v387_v0 = vsel %vm374_vm8, %v1819_v62, 0.0  ;;  %v425_v8 = vpop.f32.mrf.mxu0  ;;  %v428_v13 = vpop.f32.mrf.mxu1 }
 0x4fb   :  { %1820 = vpow2.f32 %v385_v63  ;;  %388 = vadd.xlane.f32.xlu1 %v387_v0 }
 0x501   :  { %v1821_v2 = vpop.eup %1820 }
 0x502   :  { %v390_v3 = vsel %vm374_vm8, %v1821_v2, 0.0 }
 0x503   :  { %391 = vadd.xlane.f32.xlu1 %v390_v3 }
 0x56e   :  { %v389_v4 = vpop.xlane.xlu1 %388 }
 0x56f   :  { %1822 = vlog2.f32 %v389_v4 }
 0x575   :  { %v1823_v5 = vpop.eup %1822 }
 0x576   :  { %v394_v6 = vmul.f32 0.6931472, %v1823_v5  ;;  %v392_v7 = vpop.xlane.xlu1 %391 }
 0x577   :  { %1824 = vlog2.f32 %v392_v7 }
 0x578   :  { %v432_v9 = vadd.f32 %v394_v6, %v377_v57 }
 0x57a   :  { %v434_v10 = vsub.f32 %v425_v8, %v432_v9 }
 0x57c   :  { %437 = vst [vmem:[#allocation2 + $0x40] sm:$0xff] %v434_v10 }
 0x57d   :  { %v1825_v11 = vpop.eup %1824 }
 0x57e   :  { %v396_v12 = vmul.f32 0.6931472, %v1825_v11 }
 0x580   :  { %v433_v14 = vadd.f32 %v396_v12, %v380_v60 }
 0x582   :  { %v435_v15 = vsub.f32 %v428_v13, %v433_v14 }
 0x584   :  { %438 = vst [vmem:[#allocation2 + $0x48] sm:$0xff] %v435_v15 }
 0x585 PF:  { %s1572_s30 = sld [smem:[#allocation4 + $0x5]] }
 0x58b   :  { %p1574_p8 = scmp.le.s32.totalorder %s1572_s30, 0 }
 0x58d   :  { %444 = sbr.rel (%p1574_p8) target bundleno = 1694 (0x69e), region = 45 }
 0x592   :  { %v1575_v16 = vld [vmem:[%s2126_s14 + $0x50] sm:$0xff]  ;;  %vm448_vm10 = vcmask 64512   ;;  %v1576_v18 = vld [vmem:[%s2126_s14 + $0x58] sm:$0xff]  ;;  %v1826_v20 = vld [vmem:[%s2465_s4 + $0x5] ss:$0 sm:$0xff]  ;;  %v2051_v21 = vmov 1.0  }
 0x593   :  { %v449_v17 = vsel %vm448_vm10, %v1575_v16, -inf  ;;  %v452_v19 = vsel %vm448_vm10, %v1576_v18, -inf  ;;  %vm473_vm11 = vcmp.eq.s32.totalorder %v2131_v1, %v1826_v20 }
 0x594   :  { %450 = vmax.xlane.f32.xlu0 %v449_v17  ;;  %1578 = vmatpush.msk.msra.mxu0 %vm473_vm11, %v2051_v21 }
 0x595   :  { %1688 = vmatpush.msk.msra.mxu1 %vm473_vm11, %v2051_v21  ;;  %1579 = vmatmul.msk.f32.vlgmr.msra.gmra.mxu0 %vm448_vm10, %v1575_v16 }
 0x596   :  { %1580 = vmatmul.msk.f32.vlgmr.msra.gmra.mxu1 %vm448_vm10, %v1576_v18 }
 0x59c   :  { %453 = vmax.xlane.f32.xlu0 %v452_v19 }
 0x607   :  { %v451_v22 = vpop.xlane.xlu0 %450 }
 0x608   :  { %v455_v23 = vsub.f32 %v1575_v16, %v451_v22 }
 0x60a   :  { %v457_v24 = vmul.f32 1.442695, %v455_v23 }
 0x60c   :  { %1827 = vpow2.f32 %v457_v24 }
 0x60f   :  { %v454_v25 = vpop.xlane.xlu0 %453 }
 0x610   :  { %v456_v26 = vsub.f32 %v1576_v18, %v454_v25 }
 0x612   :  { %v1828_v27 = vpop.eup %1827  ;;  %v459_v28 = vmul.f32 1.442695, %v456_v26  ;;  %v499_v36 = vpop.f32.mrf.mxu0 }
 0x613   :  { %v461_v29 = vsel %vm448_vm10, %v1828_v27, 0.0  ;;  %v502_v41 = vpop.f32.mrf.mxu1 }
 0x614   :  { %1829 = vpow2.f32 %v459_v28  ;;  %462 = vadd.xlane.f32.xlu1 %v461_v29 }
 0x61a   :  { %v1830_v30 = vpop.eup %1829 }
 0x61b   :  { %v464_v31 = vsel %vm448_vm10, %v1830_v30, 0.0 }
 0x61c   :  { %465 = vadd.xlane.f32.xlu1 %v464_v31 }
 0x687   :  { %v463_v32 = vpop.xlane.xlu1 %462 }
 0x688   :  { %1831 = vlog2.f32 %v463_v32 }
 0x68e   :  { %v1832_v33 = vpop.eup %1831 }
 0x68f   :  { %v468_v34 = vmul.f32 0.6931472, %v1832_v33  ;;  %v466_v35 = vpop.xlane.xlu1 %465 }
 0x690   :  { %1833 = vlog2.f32 %v466_v35 }
 0x691   :  { %v506_v37 = vadd.f32 %v468_v34, %v451_v22 }
 0x693   :  { %v508_v38 = vsub.f32 %v499_v36, %v506_v37 }
 0x695   :  { %511 = vst [vmem:[#allocation2 + $0x50] sm:$0xff] %v508_v38 }
 0x696   :  { %v1834_v39 = vpop.eup %1833 }
 0x697   :  { %v470_v40 = vmul.f32 0.6931472, %v1834_v39 }
 0x699   :  { %v507_v42 = vadd.f32 %v470_v40, %v454_v25 }
 0x69b   :  { %v509_v43 = vsub.f32 %v502_v41, %v507_v42 }
 0x69d   :  { %512 = vst [vmem:[#allocation2 + $0x58] sm:$0xff] %v509_v43 }
 0x69e PF:  { %s1581_s10 = sld [smem:[#allocation4 + $0x6]] }
 0x6a4   :  { %p1583_p9 = scmp.le.s32.totalorder %s1581_s10, 0 }
 0x6a6   :  { %518 = sbr.rel (%p1583_p9) target bundleno = 1975 (0x7b7), region = 49 }
 0x6ab   :  { %v1584_v44 = vld [vmem:[%s2126_s14 + $0x60] sm:$0xff]  ;;  %vm522_vm12 = vcmask 64512   ;;  %v1585_v46 = vld [vmem:[%s2126_s14 + $0x68] sm:$0xff]  ;;  %v2052_v49 = vmov 1.0  }
 0x6ac   :  { %v523_v45 = vsel %vm522_vm12, %v1584_v44, -inf  ;;  %v526_v47 = vsel %vm522_vm12, %v1585_v46, -inf  ;;  %v1835_v48 = vld [vmem:[%s2465_s4 + $0x6] ss:$0 sm:$0xff] }
 0x6ad   :  { %524 = vmax.xlane.f32.xlu0 %v523_v45  ;;  %vm547_vm13 = vcmp.eq.s32.totalorder %v2131_v1, %v1835_v48 }
 0x6ae   :  { %1587 = vmatpush.msk.msra.mxu0 %vm547_vm13, %v2052_v49  ;;  %1689 = vmatpush.msk.msra.mxu1 %vm547_vm13, %v2052_v49 }
 0x6af   :  { %1588 = vmatmul.msk.f32.vlgmr.msra.gmra.mxu0 %vm522_vm12, %v1584_v44  ;;  %1589 = vmatmul.msk.f32.vlgmr.msra.gmra.mxu1 %vm522_vm12, %v1585_v46 }
 0x6b5   :  { %527 = vmax.xlane.f32.xlu0 %v526_v47 }
 0x720   :  { %v525_v50 = vpop.xlane.xlu0 %524 }
 0x721   :  { %v529_v51 = vsub.f32 %v1584_v44, %v525_v50 }
 0x723   :  { %v531_v52 = vmul.f32 1.442695, %v529_v51 }
 0x725   :  { %1836 = vpow2.f32 %v531_v52 }
 0x728   :  { %v528_v53 = vpop.xlane.xlu0 %527 }
 0x729   :  { %v530_v54 = vsub.f32 %v1585_v46, %v528_v53 }
 0x72b   :  { %v1837_v55 = vpop.eup %1836  ;;  %v533_v56 = vmul.f32 1.442695, %v530_v54 }
 0x72c   :  { %v535_v57 = vsel %vm522_vm12, %v1837_v55, 0.0  ;;  %v573_v0 = vpop.f32.mrf.mxu0  ;;  %v576_v6 = vpop.f32.mrf.mxu1 }
 0x72d   :  { %1838 = vpow2.f32 %v533_v56  ;;  %536 = vadd.xlane.f32.xlu1 %v535_v57 }
 0x733   :  { %v1839_v58 = vpop.eup %1838 }
 0x734   :  { %v538_v59 = vsel %vm522_vm12, %v1839_v58, 0.0 }
 0x735   :  { %539 = vadd.xlane.f32.xlu1 %v538_v59 }
 0x7a0   :  { %v537_v60 = vpop.xlane.xlu1 %536 }
 0x7a1   :  { %1840 = vlog2.f32 %v537_v60 }
 0x7a7   :  { %v1841_v61 = vpop.eup %1840 }
 0x7a8   :  { %v542_v62 = vmul.f32 0.6931472, %v1841_v61  ;;  %v540_v63 = vpop.xlane.xlu1 %539 }
 0x7a9   :  { %1842 = vlog2.f32 %v540_v63 }
 0x7aa   :  { %v580_v2 = vadd.f32 %v542_v62, %v525_v50 }
 0x7ac   :  { %v582_v3 = vsub.f32 %v573_v0, %v580_v2 }
 0x7ae   :  { %585 = vst [vmem:[#allocation2 + $0x60] sm:$0xff] %v582_v3 }
 0x7af   :  { %v1843_v4 = vpop.eup %1842 }
 0x7b0   :  { %v544_v5 = vmul.f32 0.6931472, %v1843_v4 }
 0x7b2   :  { %v581_v7 = vadd.f32 %v544_v5, %v528_v53 }
 0x7b4   :  { %v583_v8 = vsub.f32 %v576_v6, %v581_v7 }
 0x7b6   :  { %586 = vst [vmem:[#allocation2 + $0x68] sm:$0xff] %v583_v8 }
 0x7b7 PF:  { %s1590_s12 = sld [smem:[#allocation4 + $0x7]] }
 0x7bd   :  { %p1592_p10 = scmp.le.s32.totalorder %s1590_s12, 0 }
 0x7bf   :  { %592 = sbr.rel (%p1592_p10) target bundleno = 2256 (0x8d0), region = 53 }
 0x7c4   :  { %v1593_v9 = vld [vmem:[%s2126_s14 + $0x70] sm:$0xff]  ;;  %vm596_vm14 = vcmask 64512   ;;  %v1594_v11 = vld [vmem:[%s2126_s14 + $0x78] sm:$0xff]  ;;  %v1844_v13 = vld [vmem:[%s2465_s4 + $0x7] ss:$0 sm:$0xff]  ;;  %v2053_v14 = vmov 1.0  }
 0x7c5   :  { %v597_v10 = vsel %vm596_vm14, %v1593_v9, -inf  ;;  %v600_v12 = vsel %vm596_vm14, %v1594_v11, -inf  ;;  %vm621_vm15 = vcmp.eq.s32.totalorder %v2131_v1, %v1844_v13 }
 0x7c6   :  { %598 = vmax.xlane.f32.xlu0 %v597_v10  ;;  %1596 = vmatpush.msk.msra.mxu0 %vm621_vm15, %v2053_v14 }
 0x7c7   :  { %1690 = vmatpush.msk.msra.mxu1 %vm621_vm15, %v2053_v14  ;;  %1597 = vmatmul.msk.f32.vlgmr.msra.gmra.mxu0 %vm596_vm14, %v1593_v9 }
 0x7c8   :  { %1598 = vmatmul.msk.f32.vlgmr.msra.gmra.mxu1 %vm596_vm14, %v1594_v11 }
 0x7ce   :  { %601 = vmax.xlane.f32.xlu0 %v600_v12 }
 0x839   :  { %v599_v15 = vpop.xlane.xlu0 %598 }
 0x83a   :  { %v603_v16 = vsub.f32 %v1593_v9, %v599_v15 }
 0x83c   :  { %v605_v17 = vmul.f32 1.442695, %v603_v16 }
 0x83e   :  { %1845 = vpow2.f32 %v605_v17 }
 0x841   :  { %v602_v18 = vpop.xlane.xlu0 %601 }
 0x842   :  { %v604_v19 = vsub.f32 %v1594_v11, %v602_v18 }
 0x844   :  { %v1846_v20 = vpop.eup %1845  ;;  %v607_v21 = vmul.f32 1.442695, %v604_v19  ;;  %v647_v29 = vpop.f32.mrf.mxu0 }
 0x845   :  { %v609_v22 = vsel %vm596_vm14, %v1846_v20, 0.0  ;;  %v650_v34 = vpop.f32.mrf.mxu1 }
 0x846   :  { %1847 = vpow2.f32 %v607_v21  ;;  %610 = vadd.xlane.f32.xlu1 %v609_v22 }
 0x84c   :  { %v1848_v23 = vpop.eup %1847 }
 0x84d   :  { %v612_v24 = vsel %vm596_vm14, %v1848_v23, 0.0 }
 0x84e   :  { %613 = vadd.xlane.f32.xlu1 %v612_v24 }
 0x8b9   :  { %v611_v25 = vpop.xlane.xlu1 %610 }
 0x8ba   :  { %1849 = vlog2.f32 %v611_v25 }
 0x8c0   :  { %v1850_v26 = vpop.eup %1849 }
 0x8c1   :  { %v616_v27 = vmul.f32 0.6931472, %v1850_v26  ;;  %v614_v28 = vpop.xlane.xlu1 %613 }
 0x8c2   :  { %1851 = vlog2.f32 %v614_v28 }
 0x8c3   :  { %v654_v30 = vadd.f32 %v616_v27, %v599_v15 }
 0x8c5   :  { %v656_v31 = vsub.f32 %v647_v29, %v654_v30 }
 0x8c7   :  { %659 = vst [vmem:[#allocation2 + $0x70] sm:$0xff] %v656_v31 }
 0x8c8   :  { %v1852_v32 = vpop.eup %1851 }
 0x8c9   :  { %v618_v33 = vmul.f32 0.6931472, %v1852_v32 }
 0x8cb   :  { %v655_v35 = vadd.f32 %v618_v33, %v602_v18 }
 0x8cd   :  { %v657_v36 = vsub.f32 %v650_v34, %v655_v35 }
 0x8cf   :  { %660 = vst [vmem:[#allocation2 + $0x78] sm:$0xff] %v657_v36 }
 0x8d0 PF:  { %s1599_s15 = sld [smem:[#allocation4 + $0x8]] }
 0x8d6   :  { %p1601_p11 = scmp.le.s32.totalorder %s1599_s15, 0 }
 0x8d8   :  { %666 = sbr.rel (%p1601_p11) target bundleno = 2537 (0x9e9), region = 57 }
 0x8dd   :  { %v1602_v37 = vld [vmem:[%s2126_s14 + $0x80] sm:$0xff]  ;;  %vm670_vm0 = vcmask 64512   ;;  %v1603_v39 = vld [vmem:[%s2126_s14 + $0x88] sm:$0xff]  ;;  %v2054_v42 = vmov 1.0  }
 0x8de   :  { %v671_v38 = vsel %vm670_vm0, %v1602_v37, -inf  ;;  %v674_v40 = vsel %vm670_vm0, %v1603_v39, -inf  ;;  %v1853_v41 = vld [vmem:[%s2465_s4 + $0x8] ss:$0 sm:$0xff] }
 0x8df   :  { %672 = vmax.xlane.f32.xlu0 %v671_v38  ;;  %vm695_vm1 = vcmp.eq.s32.totalorder %v2131_v1, %v1853_v41 }
 0x8e0   :  { %1605 = vmatpush.msk.msra.mxu0 %vm695_vm1, %v2054_v42  ;;  %1691 = vmatpush.msk.msra.mxu1 %vm695_vm1, %v2054_v42 }
 0x8e1   :  { %1606 = vmatmul.msk.f32.vlgmr.msra.gmra.mxu0 %vm670_vm0, %v1602_v37  ;;  %1607 = vmatmul.msk.f32.vlgmr.msra.gmra.mxu1 %vm670_vm0, %v1603_v39 }
 0x8e7   :  { %675 = vmax.xlane.f32.xlu0 %v674_v40 }
 0x952   :  { %v673_v43 = vpop.xlane.xlu0 %672 }
 0x953   :  { %v677_v44 = vsub.f32 %v1602_v37, %v673_v43 }
 0x955   :  { %v679_v45 = vmul.f32 1.442695, %v677_v44 }
 0x957   :  { %1854 = vpow2.f32 %v679_v45 }
 0x95a   :  { %v676_v46 = vpop.xlane.xlu0 %675 }
 0x95b   :  { %v678_v47 = vsub.f32 %v1603_v39, %v676_v46 }
 0x95d   :  { %v1855_v48 = vpop.eup %1854  ;;  %v681_v49 = vmul.f32 1.442695, %v678_v47 }
 0x95e   :  { %v683_v50 = vsel %vm670_vm0, %v1855_v48, 0.0  ;;  %v721_v57 = vpop.f32.mrf.mxu0  ;;  %v724_v62 = vpop.f32.mrf.mxu1 }
 0x95f   :  { %1856 = vpow2.f32 %v681_v49  ;;  %684 = vadd.xlane.f32.xlu1 %v683_v50 }
 0x965   :  { %v1857_v51 = vpop.eup %1856 }
 0x966   :  { %v686_v52 = vsel %vm670_vm0, %v1857_v51, 0.0 }
 0x967   :  { %687 = vadd.xlane.f32.xlu1 %v686_v52 }
 0x9d2   :  { %v685_v53 = vpop.xlane.xlu1 %684 }
 0x9d3   :  { %1858 = vlog2.f32 %v685_v53 }
 0x9d9   :  { %v1859_v54 = vpop.eup %1858 }
 0x9da   :  { %v690_v55 = vmul.f32 0.6931472, %v1859_v54  ;;  %v688_v56 = vpop.xlane.xlu1 %687 }
 0x9db   :  { %1860 = vlog2.f32 %v688_v56 }
 0x9dc   :  { %v728_v58 = vadd.f32 %v690_v55, %v673_v43 }
 0x9de   :  { %v730_v59 = vsub.f32 %v721_v57, %v728_v58 }
 0x9e0   :  { %733 = vst [vmem:[#allocation2 + $0x80] sm:$0xff] %v730_v59 }
 0x9e1   :  { %v1861_v60 = vpop.eup %1860 }
 0x9e2   :  { %v692_v61 = vmul.f32 0.6931472, %v1861_v60 }
 0x9e4   :  { %v729_v63 = vadd.f32 %v692_v61, %v676_v46 }
 0x9e6   :  { %v731_v0 = vsub.f32 %v724_v62, %v729_v63 }
 0x9e8   :  { %734 = vst [vmem:[#allocation2 + $0x88] sm:$0xff] %v731_v0 }
 0x9e9 PF:  { %s1608_s3 = sld [smem:[#allocation4 + $0x9]] }
 0x9ef   :  { %p1610_p12 = scmp.le.s32.totalorder %s1608_s3, 0 }
 0x9f1   :  { %740 = sbr.rel (%p1610_p12) target bundleno = 2818 (0xb02), region = 61 }
 0x9f6   :  { %v1611_v2 = vld [vmem:[%s2126_s14 + $0x90] sm:$0xff]  ;;  %vm744_vm2 = vcmask 64512   ;;  %v1612_v4 = vld [vmem:[%s2126_s14 + $0x98] sm:$0xff]  ;;  %v1862_v6 = vld [vmem:[%s2465_s4 + $0x9] ss:$0 sm:$0xff]  ;;  %v2055_v7 = vmov 1.0  }
 0x9f7   :  { %v745_v3 = vsel %vm744_vm2, %v1611_v2, -inf  ;;  %v748_v5 = vsel %vm744_vm2, %v1612_v4, -inf  ;;  %vm769_vm3 = vcmp.eq.s32.totalorder %v2131_v1, %v1862_v6 }
 0x9f8   :  { %746 = vmax.xlane.f32.xlu0 %v745_v3  ;;  %1614 = vmatpush.msk.msra.mxu0 %vm769_vm3, %v2055_v7 }
 0x9f9   :  { %1692 = vmatpush.msk.msra.mxu1 %vm769_vm3, %v2055_v7  ;;  %1615 = vmatmul.msk.f32.vlgmr.msra.gmra.mxu0 %vm744_vm2, %v1611_v2 }
 0x9fa   :  { %1616 = vmatmul.msk.f32.vlgmr.msra.gmra.mxu1 %vm744_vm2, %v1612_v4 }
 0xa00   :  { %749 = vmax.xlane.f32.xlu0 %v748_v5 }
 0xa6b   :  { %v747_v8 = vpop.xlane.xlu0 %746 }
 0xa6c   :  { %v751_v9 = vsub.f32 %v1611_v2, %v747_v8 }
 0xa6e   :  { %v753_v10 = vmul.f32 1.442695, %v751_v9 }
 0xa70   :  { %1863 = vpow2.f32 %v753_v10 }
 0xa73   :  { %v750_v11 = vpop.xlane.xlu0 %749 }
 0xa74   :  { %v752_v12 = vsub.f32 %v1612_v4, %v750_v11 }
 0xa76   :  { %v1864_v13 = vpop.eup %1863  ;;  %v755_v14 = vmul.f32 1.442695, %v752_v12  ;;  %v795_v22 = vpop.f32.mrf.mxu0 }
 0xa77   :  { %v757_v15 = vsel %vm744_vm2, %v1864_v13, 0.0  ;;  %v798_v27 = vpop.f32.mrf.mxu1 }
 0xa78   :  { %1865 = vpow2.f32 %v755_v14  ;;  %758 = vadd.xlane.f32.xlu1 %v757_v15 }
 0xa7e   :  { %v1866_v16 = vpop.eup %1865 }
 0xa7f   :  { %v760_v17 = vsel %vm744_vm2, %v1866_v16, 0.0 }
 0xa80   :  { %761 = vadd.xlane.f32.xlu1 %v760_v17 }
 0xaeb   :  { %v759_v18 = vpop.xlane.xlu1 %758 }
 0xaec   :  { %1867 = vlog2.f32 %v759_v18 }
 0xaf2   :  { %v1868_v19 = vpop.eup %1867 }
 0xaf3   :  { %v764_v20 = vmul.f32 0.6931472, %v1868_v19  ;;  %v762_v21 = vpop.xlane.xlu1 %761 }
 0xaf4   :  { %1869 = vlog2.f32 %v762_v21 }
 0xaf5   :  { %v802_v23 = vadd.f32 %v764_v20, %v747_v8 }
 0xaf7   :  { %v804_v24 = vsub.f32 %v795_v22, %v802_v23 }
 0xaf9   :  { %807 = vst [vmem:[#allocation2 + $0x90] sm:$0xff] %v804_v24 }
 0xafa   :  { %v1870_v25 = vpop.eup %1869 }
 0xafb   :  { %v766_v26 = vmul.f32 0.6931472, %v1870_v25 }
 0xafd   :  { %v803_v28 = vadd.f32 %v766_v26, %v750_v11 }
 0xaff   :  { %v805_v29 = vsub.f32 %v798_v27, %v803_v28 }
 0xb01   :  { %808 = vst [vmem:[#allocation2 + $0x98] sm:$0xff] %v805_v29 }
 0xb02 PF:  { %s1617_s19 = sld [smem:[#allocation4 + $0xa]] }
 0xb08   :  { %p1619_p13 = scmp.le.s32.totalorder %s1617_s19, 0 }
 0xb0a   :  { %814 = sbr.rel (%p1619_p13) target bundleno = 3099 (0xc1b), region = 65 }
 0xb0f   :  { %v1620_v30 = vld [vmem:[%s2126_s14 + $0xa0] sm:$0xff]  ;;  %vm818_vm4 = vcmask 64512   ;;  %v1621_v32 = vld [vmem:[%s2126_s14 + $0xa8] sm:$0xff]  ;;  %v2056_v35 = vmov 1.0  }
 0xb10   :  { %v819_v31 = vsel %vm818_vm4, %v1620_v30, -inf  ;;  %v822_v33 = vsel %vm818_vm4, %v1621_v32, -inf  ;;  %v1871_v34 = vld [vmem:[%s2465_s4 + $0xa] ss:$0 sm:$0xff] }
 0xb11   :  { %820 = vmax.xlane.f32.xlu0 %v819_v31  ;;  %vm843_vm5 = vcmp.eq.s32.totalorder %v2131_v1, %v1871_v34 }
 0xb12   :  { %1623 = vmatpush.msk.msra.mxu0 %vm843_vm5, %v2056_v35  ;;  %1693 = vmatpush.msk.msra.mxu1 %vm843_vm5, %v2056_v35 }
 0xb13   :  { %1624 = vmatmul.msk.f32.vlgmr.msra.gmra.mxu0 %vm818_vm4, %v1620_v30  ;;  %1625 = vmatmul.msk.f32.vlgmr.msra.gmra.mxu1 %vm818_vm4, %v1621_v32 }
 0xb19   :  { %823 = vmax.xlane.f32.xlu0 %v822_v33 }
 0xb84   :  { %v821_v36 = vpop.xlane.xlu0 %820 }
 0xb85   :  { %v825_v37 = vsub.f32 %v1620_v30, %v821_v36 }
 0xb87   :  { %v827_v38 = vmul.f32 1.442695, %v825_v37 }
 0xb89   :  { %1872 = vpow2.f32 %v827_v38 }
 0xb8c   :  { %v824_v39 = vpop.xlane.xlu0 %823 }
 0xb8d   :  { %v826_v40 = vsub.f32 %v1621_v32, %v824_v39 }
 0xb8f   :  { %v1873_v41 = vpop.eup %1872  ;;  %v829_v42 = vmul.f32 1.442695, %v826_v40 }
 0xb90   :  { %v831_v43 = vsel %vm818_vm4, %v1873_v41, 0.0  ;;  %v869_v50 = vpop.f32.mrf.mxu0  ;;  %v872_v55 = vpop.f32.mrf.mxu1 }
 0xb91   :  { %1874 = vpow2.f32 %v829_v42  ;;  %832 = vadd.xlane.f32.xlu1 %v831_v43 }
 0xb97   :  { %v1875_v44 = vpop.eup %1874 }
 0xb98   :  { %v834_v45 = vsel %vm818_vm4, %v1875_v44, 0.0 }
 0xb99   :  { %835 = vadd.xlane.f32.xlu1 %v834_v45 }
 0xc04   :  { %v833_v46 = vpop.xlane.xlu1 %832 }
 0xc05   :  { %1876 = vlog2.f32 %v833_v46 }
 0xc0b   :  { %v1877_v47 = vpop.eup %1876 }
 0xc0c   :  { %v838_v48 = vmul.f32 0.6931472, %v1877_v47  ;;  %v836_v49 = vpop.xlane.xlu1 %835 }
 0xc0d   :  { %1878 = vlog2.f32 %v836_v49 }
 0xc0e   :  { %v876_v51 = vadd.f32 %v838_v48, %v821_v36 }
 0xc10   :  { %v878_v52 = vsub.f32 %v869_v50, %v876_v51 }
 0xc12   :  { %881 = vst [vmem:[#allocation2 + $0xa0] sm:$0xff] %v878_v52 }
 0xc13   :  { %v1879_v53 = vpop.eup %1878 }
 0xc14   :  { %v840_v54 = vmul.f32 0.6931472, %v1879_v53 }
 0xc16   :  { %v877_v56 = vadd.f32 %v840_v54, %v824_v39 }
 0xc18   :  { %v879_v57 = vsub.f32 %v872_v55, %v877_v56 }
 0xc1a   :  { %882 = vst [vmem:[#allocation2 + $0xa8] sm:$0xff] %v879_v57 }
 0xc1b PF:  { %s1626_s22 = sld [smem:[#allocation4 + $0xb]] }
 0xc21   :  { %p1628_p0 = scmp.le.s32.totalorder %s1626_s22, 0 }
 0xc23   :  { %888 = sbr.rel (%p1628_p0) target bundleno = 3380 (0xd34), region = 69 }
 0xc28   :  { %v1629_v58 = vld [vmem:[%s2126_s14 + $0xb0] sm:$0xff]  ;;  %vm892_vm6 = vcmask 64512   ;;  %v1630_v60 = vld [vmem:[%s2126_s14 + $0xb8] sm:$0xff]  ;;  %v1880_v62 = vld [vmem:[%s2465_s4 + $0xb] ss:$0 sm:$0xff]  ;;  %v2057_v63 = vmov 1.0  }
 0xc29   :  { %v893_v59 = vsel %vm892_vm6, %v1629_v58, -inf  ;;  %v896_v61 = vsel %vm892_vm6, %v1630_v60, -inf  ;;  %vm917_vm7 = vcmp.eq.s32.totalorder %v2131_v1, %v1880_v62 }
 0xc2a   :  { %894 = vmax.xlane.f32.xlu0 %v893_v59  ;;  %1632 = vmatpush.msk.msra.mxu0 %vm917_vm7, %v2057_v63 }
 0xc2b   :  { %1694 = vmatpush.msk.msra.mxu1 %vm917_vm7, %v2057_v63  ;;  %1633 = vmatmul.msk.f32.vlgmr.msra.gmra.mxu0 %vm892_vm6, %v1629_v58 }
 0xc2c   :  { %1634 = vmatmul.msk.f32.vlgmr.msra.gmra.mxu1 %vm892_vm6, %v1630_v60 }
 0xc32   :  { %897 = vmax.xlane.f32.xlu0 %v896_v61 }
 0xc9d   :  { %v895_v0 = vpop.xlane.xlu0 %894 }
 0xc9e   :  { %v899_v2 = vsub.f32 %v1629_v58, %v895_v0 }
 0xca0   :  { %v901_v3 = vmul.f32 1.442695, %v899_v2 }
 0xca2   :  { %1881 = vpow2.f32 %v901_v3 }
 0xca5   :  { %v898_v4 = vpop.xlane.xlu0 %897 }
 0xca6   :  { %v900_v5 = vsub.f32 %v1630_v60, %v898_v4 }
 0xca8   :  { %v1882_v6 = vpop.eup %1881  ;;  %v903_v7 = vmul.f32 1.442695, %v900_v5  ;;  %v943_v15 = vpop.f32.mrf.mxu0 }
 0xca9   :  { %v905_v8 = vsel %vm892_vm6, %v1882_v6, 0.0  ;;  %v946_v20 = vpop.f32.mrf.mxu1 }
 0xcaa   :  { %1883 = vpow2.f32 %v903_v7  ;;  %906 = vadd.xlane.f32.xlu1 %v905_v8 }
 0xcb0   :  { %v1884_v9 = vpop.eup %1883 }
 0xcb1   :  { %v908_v10 = vsel %vm892_vm6, %v1884_v9, 0.0 }
 0xcb2   :  { %909 = vadd.xlane.f32.xlu1 %v908_v10 }
 0xd1d   :  { %v907_v11 = vpop.xlane.xlu1 %906 }
 0xd1e   :  { %1885 = vlog2.f32 %v907_v11 }
 0xd24   :  { %v1886_v12 = vpop.eup %1885 }
 0xd25   :  { %v912_v13 = vmul.f32 0.6931472, %v1886_v12  ;;  %v910_v14 = vpop.xlane.xlu1 %909 }
 0xd26   :  { %1887 = vlog2.f32 %v910_v14 }
 0xd27   :  { %v950_v16 = vadd.f32 %v912_v13, %v895_v0 }
 0xd29   :  { %v952_v17 = vsub.f32 %v943_v15, %v950_v16 }
 0xd2b   :  { %955 = vst [vmem:[#allocation2 + $0xb0] sm:$0xff] %v952_v17 }
 0xd2c   :  { %v1888_v18 = vpop.eup %1887 }
 0xd2d   :  { %v914_v19 = vmul.f32 0.6931472, %v1888_v18 }
 0xd2f   :  { %v951_v21 = vadd.f32 %v914_v19, %v898_v4 }
 0xd31   :  { %v953_v22 = vsub.f32 %v946_v20, %v951_v21 }
 0xd33   :  { %956 = vst [vmem:[#allocation2 + $0xb8] sm:$0xff] %v953_v22 }
 0xd34 PF:  { %s1635_s25 = sld [smem:[#allocation4 + $0xc]] }
 0xd3a   :  { %p1637_p1 = scmp.le.s32.totalorder %s1635_s25, 0 }
 0xd3c   :  { %962 = sbr.rel (%p1637_p1) target bundleno = 3661 (0xe4d), region = 73 }
 0xd41   :  { %v1638_v23 = vld [vmem:[%s2126_s14 + $0xc0] sm:$0xff]  ;;  %vm966_vm8 = vcmask 64512   ;;  %v1639_v25 = vld [vmem:[%s2126_s14 + $0xc8] sm:$0xff]  ;;  %v2058_v28 = vmov 1.0  }
 0xd42   :  { %v967_v24 = vsel %vm966_vm8, %v1638_v23, -inf  ;;  %v970_v26 = vsel %vm966_vm8, %v1639_v25, -inf  ;;  %v1889_v27 = vld [vmem:[%s2465_s4 + $0xc] ss:$0 sm:$0xff] }
 0xd43   :  { %968 = vmax.xlane.f32.xlu0 %v967_v24  ;;  %vm991_vm9 = vcmp.eq.s32.totalorder %v2131_v1, %v1889_v27 }
 0xd44   :  { %1641 = vmatpush.msk.msra.mxu0 %vm991_vm9, %v2058_v28  ;;  %1695 = vmatpush.msk.msra.mxu1 %vm991_vm9, %v2058_v28 }
 0xd45   :  { %1642 = vmatmul.msk.f32.vlgmr.msra.gmra.mxu0 %vm966_vm8, %v1638_v23  ;;  %1643 = vmatmul.msk.f32.vlgmr.msra.gmra.mxu1 %vm966_vm8, %v1639_v25 }
 0xd4b   :  { %971 = vmax.xlane.f32.xlu0 %v970_v26 }
 0xdb6   :  { %v969_v29 = vpop.xlane.xlu0 %968 }
 0xdb7   :  { %v973_v30 = vsub.f32 %v1638_v23, %v969_v29 }
 0xdb9   :  { %v975_v31 = vmul.f32 1.442695, %v973_v30 }
 0xdbb   :  { %1890 = vpow2.f32 %v975_v31 }
 0xdbe   :  { %v972_v32 = vpop.xlane.xlu0 %971 }
 0xdbf   :  { %v974_v33 = vsub.f32 %v1639_v25, %v972_v32 }
 0xdc1   :  { %v1891_v34 = vpop.eup %1890  ;;  %v977_v35 = vmul.f32 1.442695, %v974_v33 }
 0xdc2   :  { %v979_v36 = vsel %vm966_vm8, %v1891_v34, 0.0  ;;  %v1017_v43 = vpop.f32.mrf.mxu0  ;;  %v1020_v48 = vpop.f32.mrf.mxu1 }
 0xdc3   :  { %1892 = vpow2.f32 %v977_v35  ;;  %980 = vadd.xlane.f32.xlu1 %v979_v36 }
 0xdc9   :  { %v1893_v37 = vpop.eup %1892 }
 0xdca   :  { %v982_v38 = vsel %vm966_vm8, %v1893_v37, 0.0 }
 0xdcb   :  { %983 = vadd.xlane.f32.xlu1 %v982_v38 }
 0xe36   :  { %v981_v39 = vpop.xlane.xlu1 %980 }
 0xe37   :  { %1894 = vlog2.f32 %v981_v39 }
 0xe3d   :  { %v1895_v40 = vpop.eup %1894 }
 0xe3e   :  { %v986_v41 = vmul.f32 0.6931472, %v1895_v40  ;;  %v984_v42 = vpop.xlane.xlu1 %983 }
 0xe3f   :  { %1896 = vlog2.f32 %v984_v42 }
 0xe40   :  { %v1024_v44 = vadd.f32 %v986_v41, %v969_v29 }
 0xe42   :  { %v1026_v45 = vsub.f32 %v1017_v43, %v1024_v44 }
 0xe44   :  { %1029 = vst [vmem:[#allocation2 + $0xc0] sm:$0xff] %v1026_v45 }
 0xe45   :  { %v1897_v46 = vpop.eup %1896 }
 0xe46   :  { %v988_v47 = vmul.f32 0.6931472, %v1897_v46 }
 0xe48   :  { %v1025_v49 = vadd.f32 %v988_v47, %v972_v32 }
 0xe4a   :  { %v1027_v50 = vsub.f32 %v1020_v48, %v1025_v49 }
 0xe4c   :  { %1030 = vst [vmem:[#allocation2 + $0xc8] sm:$0xff] %v1027_v50 }
 0xe4d PF:  { %s1644_s28 = sld [smem:[#allocation4 + $0xd]] }
 0xe53   :  { %p1646_p2 = scmp.le.s32.totalorder %s1644_s28, 0 }
 0xe55   :  { %1036 = sbr.rel (%p1646_p2) target bundleno = 3942 (0xf66), region = 77 }
 0xe5a   :  { %v1647_v51 = vld [vmem:[%s2126_s14 + $0xd0] sm:$0xff]  ;;  %vm1040_vm10 = vcmask 64512   ;;  %v1648_v53 = vld [vmem:[%s2126_s14 + $0xd8] sm:$0xff]  ;;  %v1898_v55 = vld [vmem:[%s2465_s4 + $0xd] ss:$0 sm:$0xff]  ;;  %v2059_v56 = vmov 1.0  }
 0xe5b   :  { %v1041_v52 = vsel %vm1040_vm10, %v1647_v51, -inf  ;;  %v1044_v54 = vsel %vm1040_vm10, %v1648_v53, -inf  ;;  %vm1065_vm11 = vcmp.eq.s32.totalorder %v2131_v1, %v1898_v55 }
 0xe5c   :  { %1042 = vmax.xlane.f32.xlu0 %v1041_v52  ;;  %1650 = vmatpush.msk.msra.mxu0 %vm1065_vm11, %v2059_v56 }
 0xe5d   :  { %1696 = vmatpush.msk.msra.mxu1 %vm1065_vm11, %v2059_v56  ;;  %1651 = vmatmul.msk.f32.vlgmr.msra.gmra.mxu0 %vm1040_vm10, %v1647_v51 }
 0xe5e   :  { %1652 = vmatmul.msk.f32.vlgmr.msra.gmra.mxu1 %vm1040_vm10, %v1648_v53 }
 0xe64   :  { %1045 = vmax.xlane.f32.xlu0 %v1044_v54 }
 0xecf   :  { %v1043_v57 = vpop.xlane.xlu0 %1042 }
 0xed0   :  { %v1047_v58 = vsub.f32 %v1647_v51, %v1043_v57 }
 0xed2   :  { %v1049_v59 = vmul.f32 1.442695, %v1047_v58 }
 0xed4   :  { %1899 = vpow2.f32 %v1049_v59 }
 0xed7   :  { %v1046_v60 = vpop.xlane.xlu0 %1045 }
 0xed8   :  { %v1048_v61 = vsub.f32 %v1648_v53, %v1046_v60 }
 0xeda   :  { %v1900_v62 = vpop.eup %1899  ;;  %v1051_v63 = vmul.f32 1.442695, %v1048_v61  ;;  %v1091_v8 = vpop.f32.mrf.mxu0 }
 0xedb   :  { %v1053_v0 = vsel %vm1040_vm10, %v1900_v62, 0.0  ;;  %v1094_v13 = vpop.f32.mrf.mxu1 }
 0xedc   :  { %1901 = vpow2.f32 %v1051_v63  ;;  %1054 = vadd.xlane.f32.xlu1 %v1053_v0 }
 0xee2   :  { %v1902_v2 = vpop.eup %1901 }
 0xee3   :  { %v1056_v3 = vsel %vm1040_vm10, %v1902_v2, 0.0 }
 0xee4   :  { %1057 = vadd.xlane.f32.xlu1 %v1056_v3 }
 0xf4f   :  { %v1055_v4 = vpop.xlane.xlu1 %1054 }
 0xf50   :  { %1903 = vlog2.f32 %v1055_v4 }
 0xf56   :  { %v1904_v5 = vpop.eup %1903 }
 0xf57   :  { %v1060_v6 = vmul.f32 0.6931472, %v1904_v5  ;;  %v1058_v7 = vpop.xlane.xlu1 %1057 }
 0xf58   :  { %1905 = vlog2.f32 %v1058_v7 }
 0xf59   :  { %v1098_v9 = vadd.f32 %v1060_v6, %v1043_v57 }
 0xf5b   :  { %v1100_v10 = vsub.f32 %v1091_v8, %v1098_v9 }
 0xf5d   :  { %1103 = vst [vmem:[#allocation2 + $0xd0] sm:$0xff] %v1100_v10 }
 0xf5e   :  { %v1906_v11 = vpop.eup %1905 }
 0xf5f   :  { %v1062_v12 = vmul.f32 0.6931472, %v1906_v11 }
 0xf61   :  { %v1099_v14 = vadd.f32 %v1062_v12, %v1046_v60 }
 0xf63   :  { %v1101_v15 = vsub.f32 %v1094_v13, %v1099_v14 }
 0xf65   :  { %1104 = vst [vmem:[#allocation2 + $0xd8] sm:$0xff] %v1101_v15 }
 0xf66 PF:  { %s1653_s8 = sld [smem:[#allocation4 + $0xe]] }
 0xf6c   :  { %p1655_p3 = scmp.le.s32.totalorder %s1653_s8, 0 }
 0xf6e   :  { %1110 = sbr.rel (%p1655_p3) target bundleno = 4223 (0x107f), region = 81 }
 0xf73   :  { %v1656_v16 = vld [vmem:[%s2126_s14 + $0xe0] sm:$0xff]  ;;  %vm1114_vm12 = vcmask 64512   ;;  %v1657_v18 = vld [vmem:[%s2126_s14 + $0xe8] sm:$0xff]  ;;  %v2060_v21 = vmov 1.0  }
 0xf74   :  { %v1115_v17 = vsel %vm1114_vm12, %v1656_v16, -inf  ;;  %v1118_v19 = vsel %vm1114_vm12, %v1657_v18, -inf  ;;  %v1907_v20 = vld [vmem:[%s2465_s4 + $0xe] ss:$0 sm:$0xff] }
 0xf75   :  { %1116 = vmax.xlane.f32.xlu0 %v1115_v17  ;;  %vm1139_vm13 = vcmp.eq.s32.totalorder %v2131_v1, %v1907_v20 }
 0xf76   :  { %1659 = vmatpush.msk.msra.mxu0 %vm1139_vm13, %v2060_v21  ;;  %1697 = vmatpush.msk.msra.mxu1 %vm1139_vm13, %v2060_v21 }
 0xf77   :  { %1660 = vmatmul.msk.f32.vlgmr.msra.gmra.mxu0 %vm1114_vm12, %v1656_v16  ;;  %1661 = vmatmul.msk.f32.vlgmr.msra.gmra.mxu1 %vm1114_vm12, %v1657_v18 }
 0xf7d   :  { %1119 = vmax.xlane.f32.xlu0 %v1118_v19 }
 0xfe8   :  { %v1117_v22 = vpop.xlane.xlu0 %1116 }
 0xfe9   :  { %v1121_v23 = vsub.f32 %v1656_v16, %v1117_v22 }
 0xfeb   :  { %v1123_v24 = vmul.f32 1.442695, %v1121_v23 }
 0xfed   :  { %1908 = vpow2.f32 %v1123_v24 }
 0xff0   :  { %v1120_v25 = vpop.xlane.xlu0 %1119 }
 0xff1   :  { %v1122_v26 = vsub.f32 %v1657_v18, %v1120_v25 }
 0xff3   :  { %v1909_v27 = vpop.eup %1908  ;;  %v1125_v28 = vmul.f32 1.442695, %v1122_v26 }
 0xff4   :  { %v1127_v29 = vsel %vm1114_vm12, %v1909_v27, 0.0  ;;  %v1165_v36 = vpop.f32.mrf.mxu0  ;;  %v1168_v41 = vpop.f32.mrf.mxu1 }
 0xff5   :  { %1910 = vpow2.f32 %v1125_v28  ;;  %1128 = vadd.xlane.f32.xlu1 %v1127_v29 }
 0xffb   :  { %v1911_v30 = vpop.eup %1910 }
 0xffc   :  { %v1130_v31 = vsel %vm1114_vm12, %v1911_v30, 0.0 }
 0xffd   :  { %1131 = vadd.xlane.f32.xlu1 %v1130_v31 }
0x1068   :  { %v1129_v32 = vpop.xlane.xlu1 %1128 }
0x1069   :  { %1912 = vlog2.f32 %v1129_v32 }
0x106f   :  { %v1913_v33 = vpop.eup %1912 }
0x1070   :  { %v1134_v34 = vmul.f32 0.6931472, %v1913_v33  ;;  %v1132_v35 = vpop.xlane.xlu1 %1131 }
0x1071   :  { %1914 = vlog2.f32 %v1132_v35 }
0x1072   :  { %v1172_v37 = vadd.f32 %v1134_v34, %v1117_v22 }
0x1074   :  { %v1174_v38 = vsub.f32 %v1165_v36, %v1172_v37 }
0x1076   :  { %1177 = vst [vmem:[#allocation2 + $0xe0] sm:$0xff] %v1174_v38 }
0x1077   :  { %v1915_v39 = vpop.eup %1914 }
0x1078   :  { %v1136_v40 = vmul.f32 0.6931472, %v1915_v39 }
0x107a   :  { %v1173_v42 = vadd.f32 %v1136_v40, %v1120_v25 }
0x107c   :  { %v1175_v43 = vsub.f32 %v1168_v41, %v1173_v42 }
0x107e   :  { %1178 = vst [vmem:[#allocation2 + $0xe8] sm:$0xff] %v1175_v43 }
0x107f PF:  { %s1662_s11 = sld [smem:[#allocation4 + $0xf]] }
0x1085   :  { %p1664_p4 = scmp.le.s32.totalorder %s1662_s11, 0 }
0x1087   :  { %1184 = sbr.rel (%p1664_p4) target bundleno = 4504 (0x1198), region = 85 }
0x108c   :  { %v1665_v44 = vld [vmem:[%s2126_s14 + $0xf0] sm:$0xff]  ;;  %vm1188_vm14 = vcmask 64512   ;;  %v1666_v46 = vld [vmem:[%s2126_s14 + $0xf8] sm:$0xff]  ;;  %v1916_v48 = vld [vmem:[%s2465_s4 + $0xf] ss:$0 sm:$0xff]  ;;  %v2061_v49 = vmov 1.0  }
0x108d   :  { %v1189_v45 = vsel %vm1188_vm14, %v1665_v44, -inf  ;;  %v1192_v47 = vsel %vm1188_vm14, %v1666_v46, -inf  ;;  %vm1213_vm15 = vcmp.eq.s32.totalorder %v2131_v1, %v1916_v48 }
0x108e   :  { %1190 = vmax.xlane.f32.xlu0 %v1189_v45  ;;  %1668 = vmatpush.msk.msra.mxu0 %vm1213_vm15, %v2061_v49 }
0x108f   :  { %1698 = vmatpush.msk.msra.mxu1 %vm1213_vm15, %v2061_v49  ;;  %1669 = vmatmul.msk.f32.vlgmr.msra.gmra.mxu0 %vm1188_vm14, %v1665_v44 }
0x1090   :  { %1670 = vmatmul.msk.f32.vlgmr.msra.gmra.mxu1 %vm1188_vm14, %v1666_v46 }
0x1096   :  { %1193 = vmax.xlane.f32.xlu0 %v1192_v47 }
0x1101   :  { %v1191_v50 = vpop.xlane.xlu0 %1190 }
0x1102   :  { %v1195_v51 = vsub.f32 %v1665_v44, %v1191_v50 }
0x1104   :  { %v1197_v52 = vmul.f32 1.442695, %v1195_v51 }
0x1106   :  { %1917 = vpow2.f32 %v1197_v52 }
0x1109   :  { %v1194_v53 = vpop.xlane.xlu0 %1193 }
0x110a   :  { %v1196_v54 = vsub.f32 %v1666_v46, %v1194_v53 }
0x110c   :  { %v1918_v55 = vpop.eup %1917  ;;  %v1199_v56 = vmul.f32 1.442695, %v1196_v54  ;;  %v1239_v63 = vpop.f32.mrf.mxu0 }
0x110d   :  { %v1201_v57 = vsel %vm1188_vm14, %v1918_v55, 0.0  ;;  %v1242_v5 = vpop.f32.mrf.mxu1 }
0x110e   :  { %1919 = vpow2.f32 %v1199_v56  ;;  %1202 = vadd.xlane.f32.xlu1 %v1201_v57 }
0x1114   :  { %v1920_v1 = vpop.eup %1919 }
0x1115   :  { %v1204_v58 = vsel %vm1188_vm14, %v1920_v1, 0.0 }
0x1116   :  { %1205 = vadd.xlane.f32.xlu1 %v1204_v58 }
0x1181   :  { %v1203_v59 = vpop.xlane.xlu1 %1202 }
0x1182   :  { %1921 = vlog2.f32 %v1203_v59 }
0x1188   :  { %v1922_v60 = vpop.eup %1921 }
0x1189   :  { %v1208_v61 = vmul.f32 0.6931472, %v1922_v60  ;;  %v1206_v62 = vpop.xlane.xlu1 %1205 }
0x118a   :  { %1923 = vlog2.f32 %v1206_v62 }
0x118b   :  { %v1246_v0 = vadd.f32 %v1208_v61, %v1191_v50 }
0x118d   :  { %v1248_v2 = vsub.f32 %v1239_v63, %v1246_v0 }
0x118f   :  { %1251 = vst [vmem:[#allocation2 + $0xf0] sm:$0xff] %v1248_v2 }
0x1190   :  { %v1924_v3 = vpop.eup %1923 }
0x1191   :  { %v1210_v4 = vmul.f32 0.6931472, %v1924_v3 }
0x1193   :  { %v1247_v6 = vadd.f32 %v1210_v4, %v1194_v53 }
0x1195   :  { %v1249_v7 = vsub.f32 %v1242_v5, %v1247_v6 }
0x1197   :  { %1252 = vst [vmem:[#allocation2 + $0xf8] sm:$0xff] %v1249_v7 }
0x1198 PF:  { %v1259_v8 = vld [vmem:[%s2465_s4] sm:$0xff]  ;;  %s2062_s13 = smov 2   ;;  %v1260_v9 = vld [vmem:[%s2465_s4 + $0x8] sm:$0xff]  ;;  %s2331_s17 = sld [smem:[#allocation5]]  ;;  %v1257_v22 = vlaneseq  ;;  %v2063_v48 = vmov -1e+30  }
0x1199   :  { %1269 = vrot.lane.b32.xlu0 %v1259_v8, %s2062_s13  ;;  %v1287_v10 = vld [vmem:[#allocation2] ss:$16 sm:$0x3]  ;;  %v2351_v41 = vld [vmem:[%s2466_s5 + $0x8] sm:$0xff]  ;;  %vm1265_vm6 = vcmp.ne.s32.totalorder %v1259_v8, 0  ;;  %vm1266_vm10 = vcmp.ne.s32.totalorder %v1260_v9, 0 }
0x119a   :  { %v1288_v11 = vld [vmem:[#allocation2] ss:$16 sm:$0xc]  ;;  %v2338_v25 = vand.u32 127, %v1257_v22  ;;  %v2361_v44 = vld [vmem:[%s2467_s6 + $0x8] sm:$0xff] }
0x119b   :  { %v1295_v12 = vld [vmem:[#allocation2 + $0x80] ss:$16 sm:$0x3]  ;;  %v1289_v14 = vor.u32 %v1288_v11, %v1287_v10 }
0x119c   :  { %v1296_v13 = vld [vmem:[#allocation2 + $0x80] ss:$16 sm:$0xc]  ;;  %vm1279_vm0 = vcmp.ge.s32.totalorder %v2338_v25, 1  ;;  %vm1280_vm1 = vcmp.ge.s32.totalorder %v2338_v25, 2  ;;  %vm1286_vm2 = vcmp.lt.s32.totalorder %v2338_v25, 2 }
0x119d   :  { %v1297_v15 = vor.u32 %v1296_v13, %v1295_v12  ;;  %v1290_v16 = vld [vmem:[#allocation2] ss:$16 sm:$0x30]  ;;  %v1261_v46 = vand.u32 1, %v2338_v25  ;;  %vm1263_vm4 = vcmp.ge.s32.totalorder %v2338_v25, 3 }
0x119e   :  { %s2334_s3 = sadd.s32 4294967295, %s2331_s17  ;;  %v1298_v17 = vld [vmem:[#allocation2 + $0x80] ss:$16 sm:$0x30]  ;;  %v1291_v18 = vor.u32 %v1290_v16, %v1289_v14  ;;  %p1676_p6 = scmp.le.s32.totalorder %s2331_s17, 1 }
0x119f   :  { %p1305_p5 = scmp.lt.s32.totalorder %s2334_s3, 1  ;;  %v1299_v19 = vor.u32 %v1298_v17, %v1297_v15  ;;  %v1292_v20 = vld [vmem:[#allocation2] ss:$16 sm:$0xc0]  ;;  %vm1262_vm3 = vcmp.eq.s32.totalorder %v1261_v46, 1 }
0x11a0   :  { %v1300_v21 = vld [vmem:[#allocation2 + $0x80] ss:$16 sm:$0xc0]  ;;  %v1293_v23 = vor.u32 %v1292_v20, %v1291_v18  ;;  %vm1264_vm5 = vmand %vm1262_vm3, %vm1263_vm4 }
0x11a1   :  { %1271 = vrot.lane.b32.xlu0 %v1260_v9, %s2062_s13  ;;  %s1306_s4 = scalar_select %p1305_p5, %s2334_s3, 1  ;;  %v1301_v24 = vor.u32 %v1300_v21, %v1299_v19  ;;  %v2346_v40 = vld [vmem:[%s2466_s5] sm:$0xff]  ;;  %vm1267_vm7 = vmand %vm1264_vm5, %vm1265_vm6 }
0x11a2   :  { %v1302_v26 = vsel %vm1286_vm2, %v1293_v23, -1e+30   ;;  %v2356_v42 = vld [vmem:[%s2467_s6] sm:$0xff]  ;;  %vm1268_vm11 = vmand %vm1264_vm5, %vm1266_vm10  ;;  %s2382_s5 = smov (!%p1676_p6), 1  }
0x11a3   :  { %v1303_v27 = vsel %vm1286_vm2, %v1301_v24, -1e+30   ;;  %s1307_s2 = scalar_lea.vmem [#allocation2], %s1306_s4  ;;  %v2470_v53 = vmov %v1302_v26 }
0x11a4   :  { %v1308_v28 = vld [vmem:[%s1307_s2] ss:$16 sm:$0x3]  ;;  %v2469_v52 = vmov %v1303_v27 }
0x11a5   :  { %v1309_v29 = vld [vmem:[%s1307_s2] ss:$16 sm:$0xc] }
0x11a6   :  { %v1310_v30 = vor.u32 %v1309_v29, %v1308_v28  ;;  %v1672_v31 = vld [vmem:[%s1307_s2 + $0x80] ss:$16 sm:$0x3] }
0x11a7   :  { %v1673_v32 = vld [vmem:[%s1307_s2 + $0x80] ss:$16 sm:$0xc] }
0x11a8   :  { %v1311_v33 = vld [vmem:[%s1307_s2] ss:$16 sm:$0x30]  ;;  %v1318_v34 = vor.u32 %v1673_v32, %v1672_v31 }
0x11a9   :  { %v1674_v35 = vld [vmem:[%s1307_s2 + $0x80] ss:$16 sm:$0x30]  ;;  %v1312_v36 = vor.u32 %v1311_v33, %v1310_v30 }
0x11aa   :  { %v1313_v37 = vld [vmem:[%s1307_s2] ss:$16 sm:$0xc0]  ;;  %v1320_v38 = vor.u32 %v1674_v35, %v1318_v34 }
0x11ab   :  { %v1675_v39 = vld [vmem:[%s1307_s2 + $0x80] ss:$16 sm:$0xc0]  ;;  %v1314_v43 = vor.u32 %v1313_v37, %v1312_v36  }
0x11ac   :  { %v1322_v45 = vor.u32 %v1675_v39, %v1320_v38  }
0x120b   :  { %v1270_v47 = vpop.permute.xlu0 %1269 }
0x120c   :  { %vm1273_vm8 = vcmp.ne.s32.totalorder %v1259_v8, %v1270_v47 }
0x120d   :  { %vm1275_vm9 = vmand %vm1267_vm7, %vm1273_vm8 }
0x120e   :  { %v2365_v49 = vsel %vm1275_vm9, 0.0, %v2063_v48 }
0x1212   :  { %1514 = sbr.rel (%p1676_p6) target bundleno = 4791 (0x12b7), region = 148 }
0x1213   :  { %v1272_v50 = vpop.permute.xlu0 %1271 }
0x1214   :  { %vm1274_vm12 = vcmp.ne.s32.totalorder %v1260_v9, %v1272_v50 }
0x1215   :  { %vm1276_vm13 = vmand %vm1268_vm11, %vm1274_vm12 }
0x1216   :  { %v2367_v51 = vsel %vm1276_vm13, 0.0, %v2063_v48 }
0x1217 LB: > { %v2064_v54 = vmov 0   ;;  %s2065_s6 = smov 2   ;;  %s2066_s26 = smov 1   ;;  %v1398_v55 = vstv %s2035_s5  ;;  %s2035_s5 = sphi %s2382_s5, %s2399_s5   ;;  %v2031_v26 = vphi %v1302_v26, %v2474_v26   ;;  %v2027_v27 = vphi %v1303_v27, %v2473_v27   ;;  %v2023_v43 = vphi %v1314_v43, %v2472_v43   ;;  %v2019_v45 = vphi %v1322_v45, %v2471_v45  }
0x1218   : > { %1925 = vset.pattern.permute.xlu2 %v2064_v54  ;;  %1926 = vset.pattern.permute.xlu0 %v2064_v54  ;;  %s2399_s5 = sadd.s32 1, %s2035_s5   ;;  %vm1399_vm14 = vcmp.lt.s32.totalorder %v1398_v55, %v2346_v40  ;;  %vm1400_vm15 = vcmp.lt.s32.totalorder %v1398_v55, %v2351_v41 }
0x1219   : > { %1358 = vrot.lane.b32.xlu1 %v2031_v26, %s2065_s6  ;;  %1352 = vrot.lane.b32.xlu0 %v2031_v26, %s2066_s26  ;;  %p1334_p7 = scmp.lt.s32.totalorder %s2399_s5, %s2334_s3  ;;  %v1401_v56 = vsel %vm1399_vm14, 1, %v2064_v54  ;;  %v1402_v57 = vsel %vm1400_vm15, 1, %v2064_v54  ;;  %p1325_p8 = scmp.ge.s32.totalorder %s2399_s5, %s2331_s17 }
0x121a   : > { %1404 = vperm.xlu2 %1925, %v1401_v56  }
0x121b   : > { %s1335_s27 = scalar_select %p1334_p7, %s2399_s5, %s2334_s3 }
0x121d   : > { %s1336_s28 = scalar_lea.vmem [#allocation2], %s1335_s27 }
0x121e   : > { %v1337_v1 = vld [vmem:[%s1336_s28] ss:$16 sm:$0x3] }
0x121f   : > { %v1338_v58 = vld [vmem:[%s1336_s28] ss:$16 sm:$0xc] }
0x1220   : > { %v1339_v59 = vor.u32 %v1338_v58, %v1337_v1  ;;  %v1340_v60 = vld [vmem:[%s1336_s28] ss:$16 sm:$0x30] }
0x1221   : > { %1360 = vrot.lane.b32.xlu1 %v2027_v27, %s2065_s6  ;;  %1354 = vrot.lane.b32.xlu0 %v2027_v27, %s2066_s26  ;;  %v2409_v61 = vld [vmem:[%s1336_s28] ss:$16 sm:$0xc0] }
0x1222   : > { %v1677_v62 = vld [vmem:[%s1336_s28 + $0x80] ss:$16 sm:$0x3]  ;;  %v2411_v0 = vor.u32 %v1340_v60, %v1339_v59  ;;  %1407 = vperm.xlu2 %1925, %v1402_v57  }
0x1223   : > { %v1678_v63 = vld [vmem:[%s1336_s28 + $0x80] ss:$16 sm:$0xc] }
0x1224   : > { %v1347_v2 = vor.u32 %v1678_v63, %v1677_v62  ;;  %v1679_v3 = vld [vmem:[%s1336_s28 + $0x80] ss:$16 sm:$0x30]  ;;  %v1343_v5 = vor.u32 %v2409_v61, %v2411_v0  }
0x1225   : > { %v1680_v4 = vld [vmem:[%s1336_s28 + $0x80] ss:$16 sm:$0xc0] }
0x1226   : > { %v1349_v6 = vor.u32 %v1679_v3, %v1347_v2 }
0x1228   : > { %v1351_v7 = vor.u32 %v1680_v4, %v1349_v6  }
0x1274   : > { %v1405_v55 = vpop.permute.xlu2 %1404 }
0x1275   : > { %vm1409_vm2 = vcmp.eq.s32.totalorder %v1405_v55, 1 }
0x127c   : > { %v1408_v61 = vpop.permute.xlu2 %1407 }
0x127d   : > { %vm1410_vm3 = vcmp.eq.s32.totalorder %v1408_v61, 1 }
0x128b   : > { %v1359_v8 = vpop.permute.xlu1 %1358  ;;  %v1353_v9 = vpop.permute.xlu0 %1352 }
0x128c   : > { %v1362_v10 = vsel %vm1280_vm1, %v1359_v8, -1e+30  ;;  %v1356_v11 = vsel %vm1279_vm0, %v1353_v9, -1e+30 }
0x128d   : > { %v1364_v12 = vadd.f32 %v1362_v10, %v2365_v49  ;;  %v1366_v13 = vmax.f32 %v2031_v26, %v1356_v11  ;;  %v1368_v14 = vmin.f32 %v2031_v26, %v1356_v11 }
0x128f   : > { %v1370_v15 = vmax.f32 %v1366_v13, %v1364_v12  ;;  %v1372_v16 = vmin.f32 %v1366_v13, %v1364_v12 }
0x1291   : > { %v1374_v17 = vsub.f32 %v1372_v16, %v1370_v15  ;;  %v1382_v18 = vsub.f32 %v1368_v14, %v1370_v15 }
0x1293   : > { %v1376_v19 = vmul.f32 1.442695, %v1374_v17  ;;  %v1384_v20 = vmul.f32 1.442695, %v1382_v18  ;;  %v1361_v21 = vpop.permute.xlu1 %1360  ;;  %v1355_v22 = vpop.permute.xlu0 %1354 }
0x1294   : > { %v1363_v23 = vsel %vm1280_vm1, %v1361_v21, -1e+30  ;;  %v1357_v24 = vsel %vm1279_vm0, %v1355_v22, -1e+30 }
0x1295   : > { %1927 = vpow2.f32 %v1376_v19  ;;  %v1365_v28 = vadd.f32 %v1363_v23, %v2367_v51  ;;  %v1367_v29 = vmax.f32 %v2027_v27, %v1357_v24  ;;  %v1369_v30 = vmin.f32 %v2027_v27, %v1357_v24 }
0x1296   : > { %1929 = vpow2.f32 %v1384_v20 }
0x1297   : > { %v1371_v31 = vmax.f32 %v1367_v29, %v1365_v28  ;;  %v1373_v32 = vmin.f32 %v1367_v29, %v1365_v28 }
0x1299   : > { %v1375_v33 = vsub.f32 %v1373_v32, %v1371_v31  ;;  %v1383_v34 = vsub.f32 %v1369_v30, %v1371_v31 }
0x129b   : > { %v1928_v35 = vpop.eup %1927  ;;  %v1378_v36 = vmul.f32 1.442695, %v1375_v33  ;;  %v1386_v37 = vmul.f32 1.442695, %v1383_v34 }
0x129c   : > { %v1380_v38 = vadd.f32 1.0, %v1928_v35  ;;  %v1930_v39 = vpop.eup %1929 }
0x129d   : > { %1931 = vpow2.f32 %v1378_v36 }
0x129e   : > { %v1388_v46 = vadd.f32 %v1930_v39, %v1380_v38  ;;  %1933 = vpow2.f32 %v1386_v37 }
0x12a0   : > { %1935 = vlog2.f32 %v1388_v46 }
0x12a3   : > { %v1932_v47 = vpop.eup %1931 }
0x12a4   : > { %v1381_v48 = vadd.f32 1.0, %v1932_v47  ;;  %v1934_v50 = vpop.eup %1933 }
0x12a6   : > { %v1936_v52 = vpop.eup %1935  ;;  %v1389_v53 = vadd.f32 %v1934_v50, %v1381_v48 }
0x12a7   : > { %v1391_v54 = vmul.f32 0.6931472, %v1936_v52 }
0x12a8   : > { %1937 = vlog2.f32 %v1389_v53 }
0x12a9   : > { %v1394_v56 = vadd.f32 %v1391_v54, %v1370_v15 }
0x12ab   : > { %v1396_v57 = vadd.f32 %v2023_v43, %v1394_v56  ;;  %v2472_v43 = vmov %v1343_v5 }
0x12ad   : > { %v1411_v1 = vsel %vm1409_vm2, %v1396_v57, %v2031_v26  }
0x12ae   : > { %v1938_v58 = vpop.eup %1937  ;;  %v2474_v26 = vmov %v1411_v1  ;;  %v2476_v53 = vmov (%p1325_p8), %v1411_v1 }
0x12af   : > { %v1393_v59 = vmul.f32 0.6931472, %v1938_v58 }
0x12b1   : > { %v1395_v60 = vadd.f32 %v1393_v59, %v1371_v31 }
0x12b2   :  { %1328 = sbr.rel (!%p1325_p8) target bundleno = 4631 (0x1217), region = 154 }
0x12b3   : > { %v1397_v62 = vadd.f32 %v2019_v45, %v1395_v60  ;;  %v2471_v45 = vmov %v1351_v7 }
0x12b5   : > { %v1412_v63 = vsel %vm1410_vm3, %v1397_v62, %v2027_v27  }
0x12b6   : > { %v2473_v27 = vmov %v1412_v63  ;;  %v2475_v52 = vmov (%p1325_p8), %v1412_v63 }
0x12b7 PF:  { %v1413_v26 = vmul.u32 2, %v2356_v42  ;;  %v2067_v0 = vmov 0   ;;  %v1414_v3 = vmul.u32 2, %v2361_v44  ;;  %s2068_s29 = smov [#allocation7]   ;;  %s1473_s10 = sshll.u32 %s2468_s7, 4  ;;  %v2043_v53 = vphi %v2470_v53, %v2476_v53   ;;  %v2039_v52 = vphi %v2469_v52, %v2475_v52   ;;  %s1474_s10 = int_to_ptr.hbm [resolvable:$true] %s1473_s10 }
0x12b8   :  { %1939 = vset.pattern.permute.xlu0 %v2067_v0  ;;  %1940 = vset.pattern.permute.xlu1 %v2067_v0  ;;  %s1471_s30 = sshll.u32 %s2068_s29, 4  ;;  %s2069_s11 = smov 128   ;;  %s1472_s30 = int_to_ptr.vmem [resolvable:$true] %s1471_s30 }
0x12b9   :  { %1418 = vperm.xlu0 %1939, %v1413_v26   ;;  %v1415_v2 = vadd.s32 1, %v1413_v26  ;;  %v1416_v27 = vadd.s32 1, %v1414_v3  ;;  %s2070_s0 = smov 8  }
0x12bb   :  { %v1681_v4 = vadd.s32 4294967294, %v1415_v2  ;;  %v1682_v40 = vadd.s32 4294967294, %v1416_v27 }
0x12bd   :  { %1428 = vperm.xlu1 %1940, %v1681_v4  }
0x12c1   :  { %1421 = vperm.xlu0 %1939, %v1414_v3  }
0x12c5   :  { %1431 = vperm.xlu1 %1940, %v1682_v40  }
0x132b   :  { %v1419_v41 = vpop.permute.xlu0 %1418 }
0x132c   :  { %vm1423_vm0 = vcmp.eq.s32.totalorder %v2338_v25, %v1419_v41 }
0x132f   :  { %v1429_v43 = vpop.permute.xlu1 %1428 }
0x1330   :  { %vm1433_vm1 = vcmp.eq.s32.totalorder %v2338_v25, %v1429_v43 }
0x1331   :  { %vm1435_vm4 = vmor %vm1423_vm0, %vm1433_vm1 }
0x1332   :  { %v1437_v42 = vsel %vm1435_vm4, %v2043_v53, -1e+30 }
0x1333   :  { %1439 = vmax.xlane.f32.xlu2 %v1437_v42  ;;  %v1422_v45 = vpop.permute.xlu0 %1421 }
0x1334   :  { %vm1424_vm5 = vcmp.eq.s32.totalorder %v2338_v25, %v1422_v45 }
0x1337   :  { %v1432_v49 = vpop.permute.xlu1 %1431 }
0x1338   :  { %vm1434_vm6 = vcmp.eq.s32.totalorder %v2338_v25, %v1432_v49 }
0x1339   :  { %vm1436_vm7 = vmor %vm1424_vm5, %vm1434_vm6 }
0x133a   :  { %v1438_v44 = vsel %vm1436_vm7, %v2039_v52, -1e+30 }
0x133b   :  { %1441 = vmax.xlane.f32.xlu2 %v1438_v44 }
0x13a6   :  { %v1440_v51 = vpop.xlane.xlu2 %1439 }
0x13a7   :  { %v1443_v5 = vsub.f32 %v1437_v42, %v1440_v51  ;;  %vm1459_vm8 = vcmp.le.f32.partialorder %v1440_v51, -5e+29 }
0x13a9   :  { %v1445_v6 = vmul.f32 1.442695, %v1443_v5 }
0x13ab   :  { %1941 = vpow2.f32 %v1445_v6 }
0x13ae   :  { %v1442_v7 = vpop.xlane.xlu2 %1441 }
0x13af   :  { %v1444_v8 = vsub.f32 %v1438_v44, %v1442_v7  ;;  %vm1460_vm9 = vcmp.le.f32.partialorder %v1442_v7, -5e+29 }
0x13b1   :  { %v1942_v9 = vpop.eup %1941  ;;  %v1447_v10 = vmul.f32 1.442695, %v1444_v8 }
0x13b2   :  { %1449 = vadd.xlane.f32.xlu0 %v1942_v9 }
0x13b3   :  { %1943 = vpow2.f32 %v1447_v10 }
0x13b9   :  { %v1944_v11 = vpop.eup %1943 }
0x13ba   :  { %1451 = vadd.xlane.f32.xlu1 %v1944_v11 }
0x1425   :  { %v1450_v12 = vpop.xlane.xlu0 %1449 }
0x1426   :  { %1945 = vlog2.f32 %v1450_v12 }
0x142c   :  { %v1946_v13 = vpop.eup %1945 }
0x142d   :  { %v1454_v14 = vmul.f32 0.6931472, %v1946_v13  ;;  %v1452_v25 = vpop.xlane.xlu1 %1451 }
0x142e   :  { %1947 = vlog2.f32 %v1452_v25 }
0x142f   :  { %v1457_v15 = vadd.f32 %v1454_v14, %v1440_v51 }
0x1431   :  { %v1461_v16 = vsub.f32 0.0, %v1457_v15 }
0x1433   :  { %v1463_v17 = vsel %vm1459_vm8, inf, %v1461_v16 }
0x1434   :  { %v1948_v18 = vpop.eup %1947  ;;  %1465 = vst [vmem:[#allocation7] sm:$0xff] %v1463_v17 }
0x1435   :  { %v1456_v19 = vmul.f32 0.6931472, %v1948_v18 }
0x1437   :  { %v1458_v20 = vadd.f32 %v1456_v19, %v1442_v7 }
0x1439   :  { %v1462_v21 = vsub.f32 0.0, %v1458_v20 }
0x143b   :  { %v1464_v22 = vsel %vm1460_vm9, inf, %v1462_v21 }
0x143c   :  { %1466 = vst [vmem:[#allocation7 + $0x8] sm:$0xff] %v1464_v22 }
0x143d   :  { %1479 = dma.vmem_to_hbm [thread:$0]  %s1472_s30, 256, %s1474_s10, [#allocation8], %s2069_s11, %s2069_s11, %s2070_s0  }
0x143e   :  { %2015 = dma.done.wait [#allocation8], 256  }
0x143f   :  { %2016 = vsyncadd [#allocation8], 4294967040 }
0x1440   :  { %1484 = vsyncpa [#allocation8], 1 }

</bundles_post_ra>
